<compile_context>
chip_gen: v6e
topology: v6e:2x2x1
jax: 0.10.0
libtpu: 0.0.40
codegen_flags: <defaults>
</compile_context>

<pallas_src>
import functools
import math

import jax
import jax.numpy as jnp
from jax.experimental import pallas as pl
from jax.experimental.pallas import tpu as pltpu

# bf16 operands on the MXU (f32 accumulate) and bf16 activations in HBM.
MXU_DTYPE = jnp.bfloat16
ACT_DTYPE = jnp.bfloat16


# ----------------------------- VMEM budget -----------------------------

def _vmem_capacity_bytes():
    try:
        return int(pltpu.get_tpu_info().vmem_capacity_bytes)
    except Exception:
        return 64 << 20          # conservative fallback (v7x per-core VMEM)


_VMEM_CAP = _vmem_capacity_bytes()
_VMEM_LIMIT = int(min(_VMEM_CAP // 2, 96 << 20))   # scoped VMEM we request
_TILE_BUDGET = int(_VMEM_LIMIT * 0.75)             # what our tiles may consume


def _cparams(sems):
    return pltpu.CompilerParams(dimension_semantics=sems,
                                vmem_limit_bytes=_VMEM_LIMIT)


# ----------------------------- tiling helpers -----------------------------

def _round_up(x, m):
    return ((x + m - 1) // m) * m


def _pick_tile(dim, preferred, align):
    """Largest multiple of `align` <= preferred that divides dim; else full dim.

    Guarantees the (8,128) BlockSpec rule: the tile is either an aligned
    divisor of the array dim or the full dim itself.
    """
    if dim <= preferred:
        return dim
    t = (preferred // align) * align
    while t >= align:
        if dim % t == 0:
            return t
        t -= align
    return dim


def _largest_divisor_leq(n, cap):
    d = max(1, min(n, cap))
    while n % d:
        d -= 1
    return d


# ----------------------------- linear (tiled matmul + bias [+ relu]) -----------------------------

def _linear_kernel(x_ref, w_ref, b_ref, o_ref, acc_ref, *, activation):
    @pl.when(pl.program_id(2) == 0)
    def _():
        acc_ref[...] = jnp.zeros_like(acc_ref)

    acc_ref[...] += jnp.dot(
        x_ref[...].astype(MXU_DTYPE),
        w_ref[...].astype(MXU_DTYPE),
        preferred_element_type=jnp.float32)

    @pl.when(pl.program_id(2) == pl.num_programs(2) - 1)
    def _():
        y = acc_ref[...] + b_ref[...]
        if activation == "relu":
            y = jnp.maximum(y, 0.0)
        o_ref[...] = y.astype(o_ref.dtype)


def _linear_tiles(M, K, N, out_bytes):
    candidates = [(512, 512, 1024), (512, 512, 512), (256, 512, 512),
                  (256, 256, 512), (256, 256, 256), (128, 256, 256),
                  (128, 128, 256), (64, 128, 128), (8, 128, 128)]
    tm, tn, tk = 8, 128, 128
    for pm, pn, pk in candidates:
        tm = _pick_tile(M, pm, 8)
        tn = _pick_tile(N, pn, 128)
        tk = _pick_tile(K, pk, 128)
        est = (2 * 2 * (tm * tk + tk * tn + tn)       # bf16 x / w / bias, double-buffered
               + 2 * out_bytes * tm * tn              # output tile, double-buffered
               + 4 * tm * tn)                         # f32 accumulator scratch
        if est <= _TILE_BUDGET:
            return tm, tn, tk
    return tm, tn, tk


def linear(x2d, w, b, activation=None, out_dtype=ACT_DTYPE):
    """y = act(x @ w + b).  x2d: (M, K) bf16, w: (K, N) bf16, b: (N,) f32.

    No padding / slicing here: weights whose N is not a 128 multiple (the
    vocab projection) are padded once at init and sliced once downstream.
    """
    M, K = x2d.shape
    N = w.shape[1]
    tm, tn, tk = _linear_tiles(M, K, N, jnp.dtype(out_dtype).itemsize)
    grid = (M // tm, N // tn, K // tk)

    return pl.pallas_call(
        functools.partial(_linear_kernel, activation=activation),
        out_shape=jax.ShapeDtypeStruct((M, N), out_dtype),
        grid=grid,
        in_specs=[pl.BlockSpec((tm, tk), lambda i, j, k: (i, k)),
                  pl.BlockSpec((tk, tn), lambda i, j, k: (k, j)),
                  pl.BlockSpec((1, tn), lambda i, j, k: (0, j))],
        out_specs=pl.BlockSpec((tm, tn), lambda i, j, k: (i, j)),
        scratch_shapes=[pltpu.VMEM((tm, tn), jnp.float32)],
        compiler_params=_cparams(("parallel", "parallel", "arbitrary")),
    )(x2d, w, b.reshape(1, N))


# ----------------------------- fused FFN (W1 -> ReLU -> W2) -----------------------------

def _ffn_kernel(x_ref, w1_ref, b1_ref, w2_ref, b2_ref, o_ref, acc_ref):
    @pl.when(pl.program_id(1) == 0)
    def _():
        acc_ref[...] = jnp.zeros_like(acc_ref)

    h = jnp.dot(x_ref[...].astype(MXU_DTYPE), w1_ref[...].astype(MXU_DTYPE),
                preferred_element_type=jnp.float32)
    h = jnp.maximum(h + b1_ref[...], 0.0)
    acc_ref[...] += jnp.dot(h.astype(MXU_DTYPE), w2_ref[...].astype(MXU_DTYPE),
                            preferred_element_type=jnp.float32)

    @pl.when(pl.program_id(1) == pl.num_programs(1) - 1)
    def _():
        o_ref[...] = (acc_ref[...] + b2_ref[...]).astype(o_ref.dtype)


def _ffn_est(tm, tf, D):
    return (2 * 2 * (tm * D + D * tf + tf + tf * D + D)   # bf16 inputs, double-buffered
            + 2 * 2 * tm * D                              # bf16 out, double-buffered
            + 4 * tm * D                                  # f32 accumulator
            + 4 * tm * tf)                                # f32 intermediate h


def ffn(x3d, p):
    S, B, D = x3d.shape
    M = S * B
    F = p["ff_w1"].shape[1]
    x2d = x3d.reshape(M, D)

    tm, tf = 8, 128
    fits = False
    for pm, pf in [(256, 512), (256, 256), (128, 256), (128, 128),
                   (64, 128), (32, 128), (8, 128)]:
        tm = _pick_tile(M, pm, 8)
        tf = _pick_tile(F, pf, 128)
        if _ffn_est(tm, tf, D) <= _TILE_BUDGET:
            fits = True
            break

    if not fits:
        # TODO(synk): fallback for very large d_model on small-VMEM parts (v7x):
        # un-fused path tiles every dimension; the fused path keeps D un-tiled.
        h = linear(x2d, p["ff_w1"], p["ff_b1"], activation="relu")
        y = linear(h, p["ff_w2"], p["ff_b2"])
        return y.reshape(S, B, D)

    grid = (M // tm, F // tf)
    out = pl.pallas_call(
        _ffn_kernel,
        out_shape=jax.ShapeDtypeStruct((M, D), ACT_DTYPE),
        grid=grid,
        in_specs=[pl.BlockSpec((tm, D), lambda i, f: (i, 0)),
                  pl.BlockSpec((D, tf), lambda i, f: (0, f)),
                  pl.BlockSpec((1, tf), lambda i, f: (0, f)),
                  pl.BlockSpec((tf, D), lambda i, f: (f, 0)),
                  pl.BlockSpec((1, D), lambda i, f: (0, 0))],
        out_specs=pl.BlockSpec((tm, D), lambda i, f: (i, 0)),
        scratch_shapes=[pltpu.VMEM((tm, D), jnp.float32)],
        compiler_params=_cparams(("parallel", "arbitrary")),
    )(x2d, p["ff_w1"], p["ff_b1"].reshape(1, F), p["ff_w2"], p["ff_b2"].reshape(1, D))
    return out.reshape(S, B, D)


# ----------------------------- fused residual-add + LayerNorm -----------------------------

def _layernorm_kernel(*refs, eps, has_residual):
    if has_residual:
        x_ref, r_ref, g_ref, b_ref, o_ref = refs
        x = x_ref[...].astype(jnp.float32) + r_ref[...].astype(jnp.float32)
    else:
        x_ref, g_ref, b_ref, o_ref = refs
        x = x_ref[...].astype(jnp.float32)
    d = x.shape[-1]
    # Single-pass statistics: one load of the tile, one pair of XLU reductions.
    s1 = jnp.sum(x, axis=-1, keepdims=True)
    s2 = jnp.sum(x * x, axis=-1, keepdims=True)
    mean = s1 * (1.0 / d)
    var = jnp.maximum(s2 * (1.0 / d) - mean * mean, 0.0)   # guard cancellation
    y = (x - mean) * jax.lax.rsqrt(var + eps)
    o_ref[...] = (y * g_ref[...] + b_ref[...]).astype(o_ref.dtype)


def _layernorm_call(x2d, gamma, beta, residual2d=None, eps=1e-5):
    M, D = x2d.shape
    has_res = residual2d is not None
    n_streams = 3 if has_res else 2                     # bf16 in (+res) + bf16 out
    per_row = 2 * 2 * n_streams * D + 3 * 4 * D         # double-buffered IO + f32 temps
    rows = max(8, min(1024, (_TILE_BUDGET // max(per_row, 1)) // 8 * 8))
    tm = _pick_tile(M, rows, 8)

    in_specs = [pl.BlockSpec((tm, D), lambda i: (i, 0))]
    args = [x2d]
    if has_res:
        in_specs.append(pl.BlockSpec((tm, D), lambda i: (i, 0)))
        args.append(residual2d)
    in_specs += [pl.BlockSpec((1, D), lambda i: (0, 0)),
                 pl.BlockSpec((1, D), lambda i: (0, 0))]
    args += [gamma.reshape(1, D), beta.reshape(1, D)]

    return pl.pallas_call(
        functools.partial(_layernorm_kernel, eps=eps, has_residual=has_res),
        out_shape=jax.ShapeDtypeStruct((M, D), ACT_DTYPE),
        grid=(M // tm,),
        in_specs=in_specs,
        out_specs=pl.BlockSpec((tm, D), lambda i: (i, 0)),
        compiler_params=_cparams(("parallel",)),
    )(*args)


def add_layer_norm(sub_out, residual, ln):
    """LayerNorm(residual + sub_out) fused into one kernel.  residual may be None."""
    S, B, D = sub_out.shape
    r = residual.reshape(S * B, D) if residual is not None else None
    y = _layernorm_call(sub_out.reshape(S * B, D), ln["g"], ln["b"], r)
    return y.reshape(S, B, D)


# ----------------------------- flash-style multi-head attention -----------------------------

def _flash_attn_kernel(q_ref, k_ref, v_ref, o_ref, m_sc, l_sc, acc_sc,
                       *, scale, causal, tk):
    kb = pl.program_id(1)

    @pl.when(kb == 0)
    def _():
        m_sc[...] = jnp.full_like(m_sc, -jnp.inf)
        l_sc[...] = jnp.zeros_like(l_sc)
        acc_sc[...] = jnp.zeros_like(acc_sc)

    # (bh, Sq, Dh) x (bh, tk, Dh) -> (bh, Sq, tk), f32 accumulation on the MXU.
    # TODO(synk): pre-laying K as (bh, Dh, Sk) would avoid the in-kernel
    # minor-vs-minor contraction transpose through the XLU on v6e/v7x.
    s = jnp.einsum('bqd,bkd->bqk', q_ref[...], k_ref[...],
                   preferred_element_type=jnp.float32) * scale
    if causal:
        qi = jax.lax.broadcasted_iota(jnp.int32, s.shape, 1)
        ki = jax.lax.broadcasted_iota(jnp.int32, s.shape, 2) + kb * tk
        s = jnp.where(ki <= qi, s, -1e30)

    m_new = jnp.maximum(m_sc[...], jnp.max(s, axis=-1, keepdims=True))
    alpha = jnp.exp(m_sc[...] - m_new)
    p = jnp.exp(s - m_new)
    l_sc[...] = alpha * l_sc[...] + jnp.sum(p, axis=-1, keepdims=True)
    acc_sc[...] = alpha * acc_sc[...] + jnp.einsum(
        'bqk,bkd->bqd', p.astype(MXU_DTYPE), v_ref[...],
        preferred_element_type=jnp.float32)
    m_sc[...] = m_new

    @pl.when(kb == pl.num_programs(1) - 1)
    def _():
        o_ref[...] = (acc_sc[...] *
                      pl.reciprocal(l_sc[...], approx=True)).astype(o_ref.dtype)


def scaled_dot_attention(q, k, v, *, causal=False):
    """q: (B*H, Sq, Dh), k/v: (B*H, Sk, Dh) in bf16.  Online softmax over Sk tiles."""
    BH, Sq, Dh = q.shape
    Sk = k.shape[1]
    scale = 1.0 / math.sqrt(Dh)
    tk = _pick_tile(Sk, 512, 128)

    # Heads per grid step: budget-aware and megacore-aware (>= 2 steps along the
    # "parallel" BH axis so both v7x TensorCores get work).
    per_head = (2 * 2 * (2 * Sq * Dh + 2 * tk * Dh)   # bf16 q/o + k/v, double-buffered
                + 4 * (Sq * Dh + 2 * Sq)              # f32 acc/m/l scratch
                + 2 * 4 * Sq * tk)                    # f32 scores + probabilities
    cap = max(1, _TILE_BUDGET // max(per_head, 1))
    if BH >= 2:
        cap = min(cap, BH // 2)
    bh = _largest_divisor_leq(BH, cap)
    grid = (BH // bh, Sk // tk)

    # TODO(synk): output is stored per-head (last dim Dh < 128); folding heads
    # into a lane-dense (Sq, bh*Dh) slab would remove masked partial stores on v5e.
    return pl.pallas_call(
        functools.partial(_flash_attn_kernel, scale=scale, causal=causal, tk=tk),
        out_shape=jax.ShapeDtypeStruct((BH, Sq, Dh), ACT_DTYPE),
        grid=grid,
        in_specs=[pl.BlockSpec((bh, Sq, Dh), lambda i, j: (i, 0, 0)),
                  pl.BlockSpec((bh, tk, Dh), lambda i, j: (i, j, 0)),
                  pl.BlockSpec((bh, tk, Dh), lambda i, j: (i, j, 0))],
        out_specs=pl.BlockSpec((bh, Sq, Dh), lambda i, j: (i, 0, 0)),
        scratch_shapes=[pltpu.VMEM((bh, Sq, 1), jnp.float32),
                        pltpu.VMEM((bh, Sq, 1), jnp.float32),
                        pltpu.VMEM((bh, Sq, Dh), jnp.float32)],
        compiler_params=_cparams(("parallel", "arbitrary")),
    )(q, k, v)


# ----------------------------- model glue (plain JAX between kernels) -----------------------------
# TODO(synk): the head split/merge transposes between the projection and the
# attention kernel remain XLA ops; gridding the attention call over (B, H) with
# Squeezed block dims would remove them but is fragile for small H.

def self_attention(x, p, num_heads, causal=False):
    S, B, D = x.shape
    Dh = D // num_heads
    qkv = linear(x.reshape(S * B, D), p["wqkv"], p["bqkv"])      # fused Q|K|V
    qkv = qkv.reshape(S, B, 3, num_heads, Dh)
    q = qkv[:, :, 0].transpose(1, 2, 0, 3).reshape(B * num_heads, S, Dh)
    k = qkv[:, :, 1].transpose(1, 2, 0, 3).reshape(B * num_heads, S, Dh)
    v = qkv[:, :, 2].transpose(1, 2, 0, 3).reshape(B * num_heads, S, Dh)
    o = scaled_dot_attention(q, k, v, causal=causal)
    o = o.reshape(B, num_heads, S, Dh).transpose(2, 0, 1, 3).reshape(S, B, D)
    return linear(o.reshape(S * B, D), p["wo"], p["bo"]).reshape(S, B, D)


def cross_attention(x, memory, p, num_heads):
    Sq, B, D = x.shape
    Sk = memory.shape[0]
    Dh = D // num_heads
    q = linear(x.reshape(Sq * B, D), p["wq"], p["bq"]).reshape(Sq, B, num_heads, Dh)
    kv = linear(memory.reshape(Sk * B, D), p["wkv"], p["bkv"])    # fused K|V
    kv = kv.reshape(Sk, B, 2, num_heads, Dh)
    q = q.transpose(1, 2, 0, 3).reshape(B * num_heads, Sq, Dh)
    k = kv[:, :, 0].transpose(1, 2, 0, 3).reshape(B * num_heads, Sk, Dh)
    v = kv[:, :, 1].transpose(1, 2, 0, 3).reshape(B * num_heads, Sk, Dh)
    o = scaled_dot_attention(q, k, v, causal=False)
    o = o.reshape(B, num_heads, Sq, Dh).transpose(2, 0, 1, 3).reshape(Sq, B, D)
    return linear(o.reshape(Sq * B, D), p["wo"], p["bo"]).reshape(Sq, B, D)


def encoder_layer(x, p, num_heads):
    a = self_attention(x, p["self_attn"], num_heads, causal=False)
    x = add_layer_norm(a, x, p["ln1"])
    h = ffn(x, p)
    x = add_layer_norm(h, x, p["ln2"])
    return x


def decoder_layer(x, memory, p, num_heads):
    a = self_attention(x, p["self_attn"], num_heads, causal=True)   # causal tgt mask
    x = add_layer_norm(a, x, p["ln1"])
    a = cross_attention(x, memory, p["cross_attn"], num_heads)
    x = add_layer_norm(a, x, p["ln2"])
    h = ffn(x, p)
    x = add_layer_norm(h, x, p["ln3"])
    return x


def positional_encoding(max_len, d_model):
    position = jnp.arange(max_len, dtype=jnp.float32)[:, None]
    div_term = jnp.exp(jnp.arange(0, d_model, 2, dtype=jnp.float32)
                       * (-math.log(10000.0) / d_model))
    pe = jnp.zeros((max_len, d_model), jnp.float32)
    pe = pe.at[:, 0::2].set(jnp.sin(position * div_term))
    pe = pe.at[:, 1::2].set(jnp.cos(position * div_term))
    return pe[:, None, :]        # (max_len, 1, d_model) — broadcasts over batch


def transformer_forward(params, src, tgt, *, d_model, num_heads, vocab_out):
    S_src, B = src.shape
    S_tgt, _ = tgt.shape
    scale = math.sqrt(d_model)

    # _embed_tokens + PositionalEncoding (f32 math, then cast to bf16 activations).
    # TODO(synk): embedding gather stays in XLA (jnp.take); dropout omitted (eval mode).
    src_e = jnp.take(params["embed_src"], src, axis=0) * scale   # (S_src, B, D)
    tgt_e = jnp.take(params["embed_tgt"], tgt, axis=0) * scale   # (S_tgt, B, D)
    src_e = (src_e + params["pe"][:S_src]).astype(ACT_DTYPE)
    tgt_e = (tgt_e + params["pe"][:S_tgt]).astype(ACT_DTYPE)

    # Encoder stack (post-LN) + final encoder norm (nn.Transformer default).
    memory = src_e
    for lp in params["enc_layers"]:
        memory = encoder_layer(memory, lp, num_heads)
    memory = add_layer_norm(memory, None, params["enc_norm"])

    # Decoder stack with in-kernel causal self-attention mask + final decoder norm.
    x = tgt_e
    for lp in params["dec_layers"]:
        x = decoder_layer(x, memory, lp, num_heads)
    x = add_layer_norm(x, None, params["dec_norm"])

    # Output projection to vocab.  out_w/out_b were lane-padded once at init;
    # slice the padded logits once here (f32 logits).
    S, B2, D = x.shape
    out = linear(x.reshape(S * B2, D), params["out_w"], params["out_b"],
                 out_dtype=jnp.float32)
    return out.reshape(S, B2, -1)[:, :, :vocab_out]


# ----------------------------- deterministic parameter init -----------------------------

def _dense(key, fan_in, fan_out):
    k1, k2 = jax.random.split(key)
    s = 1.0 / math.sqrt(fan_in)
    w = jax.random.uniform(k1, (fan_in, fan_out), jnp.float32, -s, s)
    b = jax.random.uniform(k2, (fan_out,), jnp.float32, -s, s)
    return w, b


def _mha_self_params(key, d_model):
    kq, kk, kv, ko = jax.random.split(key, 4)
    wq, bq = _dense(kq, d_model, d_model)
    wk, bk = _dense(kk, d_model, d_model)
    wv, bv = _dense(kv, d_model, d_model)
    wo, bo = _dense(ko, d_model, d_model)
    return {"wqkv": jnp.concatenate([wq, wk, wv], axis=1).astype(MXU_DTYPE),
            "bqkv": jnp.concatenate([bq, bk, bv]),
            "wo": wo.astype(MXU_DTYPE), "bo": bo}


def _mha_cross_params(key, d_model):
    kq, kk, kv, ko = jax.random.split(key, 4)
    wq, bq = _dense(kq, d_model, d_model)
    wk, bk = _dense(kk, d_model, d_model)
    wv, bv = _dense(kv, d_model, d_model)
    wo, bo = _dense(ko, d_model, d_model)
    return {"wq": wq.astype(MXU_DTYPE), "bq": bq,
            "wkv": jnp.concatenate([wk, wv], axis=1).astype(MXU_DTYPE),
            "bkv": jnp.concatenate([bk, bv]),
            "wo": wo.astype(MXU_DTYPE), "bo": bo}


def _ln_params(d_model):
    return {"g": jnp.ones((d_model,), jnp.float32), "b": jnp.zeros((d_model,), jnp.float32)}


def _enc_layer_params(key, d_model, d_ff):
    k1, k2, k3 = jax.random.split(key, 3)
    w1, b1 = _dense(k2, d_model, d_ff)
    w2, b2 = _dense(k3, d_ff, d_model)
    return {"self_attn": _mha_self_params(k1, d_model), "ln1": _ln_params(d_model),
            "ff_w1": w1.astype(MXU_DTYPE), "ff_b1": b1,
            "ff_w2": w2.astype(MXU_DTYPE), "ff_b2": b2,
            "ln2": _ln_params(d_model)}


def _dec_layer_params(key, d_model, d_ff):
    k1, k2, k3, k4 = jax.random.split(key, 4)
    w1, b1 = _dense(k3, d_model, d_ff)
    w2, b2 = _dense(k4, d_ff, d_model)
    return {"self_attn": _mha_self_params(k1, d_model), "ln1": _ln_params(d_model),
            "cross_attn": _mha_cross_params(k2, d_model), "ln2": _ln_params(d_model),
            "ff_w1": w1.astype(MXU_DTYPE), "ff_b1": b1,
            "ff_w2": w2.astype(MXU_DTYPE), "ff_b2": b2,
            "ln3": _ln_params(d_model)}


def init_params(key, input_dim, output_dim, d_model, n_enc, n_dec, d_ff, max_len):
    keys = jax.random.split(key, 5 + n_enc + n_dec)
    params = {
        "embed_src": jax.random.normal(keys[0], (input_dim, d_model), jnp.float32),
        "embed_tgt": jax.random.normal(keys[1], (output_dim, d_model), jnp.float32),
        "pe": positional_encoding(max_len, d_model),
        "enc_layers": [_enc_layer_params(keys[2 + i], d_model, d_ff) for i in range(n_enc)],
        "dec_layers": [_dec_layer_params(keys[2 + n_enc + i], d_model, d_ff) for i in range(n_dec)],
        "enc_norm": _ln_params(d_model),
        "dec_norm": _ln_params(d_model),
    }
    ow, ob = _dense(keys[2 + n_enc + n_dec], d_model, output_dim)
    # Lane-pad the vocab projection ONCE at init (no per-forward pad/slice in linear()).
    n_pad = _round_up(output_dim, 128)
    if n_pad != output_dim:
        ow = jnp.pad(ow, ((0, 0), (0, n_pad - output_dim)))
        ob = jnp.pad(ob, ((0, n_pad - output_dim),))
    params["out_w"], params["out_b"] = ow.astype(MXU_DTYPE), ob
    return params


# ----------------------------- demo -----------------------------

if __name__ == "__main__":
    # small config consistent with the module's constructor
    input_dim, output_dim = 50, 48          # src / tgt vocab sizes
    d_model, num_heads = 32, 4
    num_enc, num_dec = 2, 2
    d_ff, max_seq = 64, 16
    S_src, S_tgt, B = 8, 8, 2

    root = jax.random.PRNGKey(0)
    k_params, k_src, k_tgt = jax.random.split(root, 3)
    params = init_params(k_params, input_dim, output_dim, d_model,
                         num_enc, num_dec, d_ff, max_seq)

    src = jax.random.randint(k_src, (S_src, B), 0, input_dim, dtype=jnp.int32)
    tgt = jax.random.randint(k_tgt, (S_tgt, B), 0, output_dim, dtype=jnp.int32)

    fwd = jax.jit(functools.partial(transformer_forward, d_model=d_model,
                                    num_heads=num_heads, vocab_out=output_dim))
    out = jax.block_until_ready(fwd(params, src, tgt))
    assert out.shape == (S_tgt, B, output_dim), out.shape
    assert bool(jnp.all(jnp.isfinite(out)))
    print("KERNEL_OK")
</pallas_src>

<mosaic_0001>
module attributes {stable_mosaic.version = 11 : i64} {
  func.func @_linear_kernel(%arg0: i32, %arg1: i32, %arg2: i32, %arg3: memref<16x32xbf16, #tpu.memory_space<vmem>>, %arg4: memref<32x96xbf16, #tpu.memory_space<vmem>>, %arg5: memref<1x96xf32, #tpu.memory_space<vmem>>, %arg6: memref<16x96xbf16, #tpu.memory_space<vmem>>, %arg7: memref<16x96xf32, #tpu.memory_space<vmem>>) attributes {dimension_semantics = [#tpu.dimension_semantics<parallel>, #tpu.dimension_semantics<parallel>, #tpu.dimension_semantics<arbitrary>], iteration_bounds = array<i64: 1, 1, 1>, scalar_prefetch = 0 : i64, scratch_operands = 1 : i64, tpu.core_type = #tpu.core_type<tc>, window_params = [{transform_indices = @transform_0, window_bounds = array<i64: 16, 32>}, {transform_indices = @transform_1, window_bounds = array<i64: 32, 96>}, {transform_indices = @transform_2, window_bounds = array<i64: 1, 96>}, {transform_indices = @transform_3, window_bounds = array<i64: 16, 96>}]} {
    %c0_i32 = arith.constant 0 : i32
    %0 = arith.cmpi eq, %arg2, %c0_i32 : i32
    %1 = arith.extui %0 : i1 to i32
    %c0_i32_0 = arith.constant 0 : i32
    %2 = arith.cmpi ne, %1, %c0_i32_0 : i32
    scf.if %2 {
      %cst_10 = arith.constant 0.000000e+00 : f32
      %12 = vector.broadcast %cst_10 : f32 to vector<16x96xf32>
      %c0_11 = arith.constant 0 : index
      %c0_12 = arith.constant 0 : index
      %13 = vector.load %arg7[%c0_11, %c0_12] : memref<16x96xf32, #tpu.memory_space<vmem>>, vector<16x96xf32>
      tpu.vector_store %arg7[%c0_11, %c0_12], %12 {strides = array<i32>} : memref<16x96xf32, #tpu.memory_space<vmem>>, vector<16x96xf32>,
    } else {
    }
    %c0 = arith.constant 0 : index
    %c0_1 = arith.constant 0 : index
    %3 = vector.load %arg7[%c0, %c0_1] : memref<16x96xf32, #tpu.memory_space<vmem>>, vector<16x96xf32>
    %c0_2 = arith.constant 0 : index
    %c0_3 = arith.constant 0 : index
    %4 = vector.load %arg3[%c0_2, %c0_3] : memref<16x32xbf16, #tpu.memory_space<vmem>>, vector<16x32xbf16>
    %c0_4 = arith.constant 0 : index
    %c0_5 = arith.constant 0 : index
    %5 = vector.load %arg4[%c0_4, %c0_5] : memref<32x96xbf16, #tpu.memory_space<vmem>>, vector<32x96xbf16>
    %cst = arith.constant dense<0.000000e+00> : vector<16x96xf32>
    %6 = tpu.matmul %4, %5, %cst {dimension_numbers = #tpu.dot_dimension_numbers<[1], [0], [0], [1], [0, 0, 1, 1], [], []>} : vector<16x32xbf16>, vector<32x96xbf16>, vector<16x96xf32> -> vector<16x96xf32>
    %7 = arith.addf %3, %6 : vector<16x96xf32>
    %c0_6 = arith.constant 0 : index
    %c0_7 = arith.constant 0 : index
    %8 = vector.load %arg7[%c0_6, %c0_7] : memref<16x96xf32, #tpu.memory_space<vmem>>, vector<16x96xf32>
    tpu.vector_store %arg7[%c0_6, %c0_7], %7 {strides = array<i32>} : memref<16x96xf32, #tpu.memory_space<vmem>>, vector<16x96xf32>,
    %c0_i32_8 = arith.constant 0 : i32
    %9 = arith.cmpi eq, %arg2, %c0_i32_8 : i32
    %10 = arith.extui %9 : i1 to i32
    %c0_i32_9 = arith.constant 0 : i32
    %11 = arith.cmpi ne, %10, %c0_i32_9 : i32
    scf.if %11 {
      %c0_10 = arith.constant 0 : index
      %c0_11 = arith.constant 0 : index
      %12 = vector.load %arg7[%c0_10, %c0_11] : memref<16x96xf32, #tpu.memory_space<vmem>>, vector<16x96xf32>
      %c0_12 = arith.constant 0 : index
      %c0_13 = arith.constant 0 : index
      %13 = vector.load %arg5[%c0_12, %c0_13] : memref<1x96xf32, #tpu.memory_space<vmem>>, vector<1x96xf32>
      %14 = vector.broadcast %13 : vector<1x96xf32> to vector<16x96xf32>
      %15 = arith.addf %12, %14 : vector<16x96xf32>
      %16 = arith.truncf %15 : vector<16x96xf32> to vector<16x96xbf16>
      %c0_14 = arith.constant 0 : index
      %c0_15 = arith.constant 0 : index
      %17 = vector.load %arg6[%c0_14, %c0_15] : memref<16x96xbf16, #tpu.memory_space<vmem>>, vector<16x96xbf16>
      tpu.vector_store %arg6[%c0_14, %c0_15], %16 {strides = array<i32>} : memref<16x96xbf16, #tpu.memory_space<vmem>>, vector<16x96xbf16>,
    } else {
    }
    return
  }
  func.func @transform_0(%arg0: i32, %arg1: i32, %arg2: i32) -> (i32, i32) {
    %c0_i32 = arith.constant 0 : i32
    return %arg0, %arg2 : i32, i32
  }
  func.func @transform_1(%arg0: i32, %arg1: i32, %arg2: i32) -> (i32, i32) {
    %c0_i32 = arith.constant 0 : i32
    return %arg2, %arg1 : i32, i32
  }
  func.func @transform_2(%arg0: i32, %arg1: i32, %arg2: i32) -> (i32, i32) {
    %c0_i32 = arith.constant 0 : i32
    %c0_i32_0 = arith.constant 0 : i32
    return %c0_i32, %arg1 : i32, i32
  }
  func.func @transform_3(%arg0: i32, %arg1: i32, %arg2: i32) -> (i32, i32) {
    %c0_i32 = arith.constant 0 : i32
    return %arg0, %arg1 : i32, i32
  }
}

module attributes {stable_mosaic.version = 11 : i64} {
  func.func @_flash_attn_kernel(%arg0: i32, %arg1: i32, %arg2: memref<4x8x8xbf16, #tpu.memory_space<vmem>>, %arg3: memref<4x8x8xbf16, #tpu.memory_space<vmem>>, %arg4: memref<4x8x8xbf16, #tpu.memory_space<vmem>>, %arg5: memref<4x8x8xbf16, #tpu.memory_space<vmem>>, %arg6: memref<4x8x1xf32, #tpu.memory_space<vmem>>, %arg7: memref<4x8x1xf32, #tpu.memory_space<vmem>>, %arg8: memref<4x8x8xf32, #tpu.memory_space<vmem>>) attributes {dimension_semantics = [#tpu.dimension_semantics<parallel>, #tpu.dimension_semantics<arbitrary>], iteration_bounds = array<i64: 2, 1>, scalar_prefetch = 0 : i64, scratch_operands = 3 : i64, tpu.core_type = #tpu.core_type<tc>, window_params = [{transform_indices = @transform_0, window_bounds = array<i64: 4, 8, 8>}, {transform_indices = @transform_1, window_bounds = array<i64: 4, 8, 8>}, {transform_indices = @transform_2, window_bounds = array<i64: 4, 8, 8>}, {transform_indices = @transform_3, window_bounds = array<i64: 4, 8, 8>}]} {
    %c0_i32 = arith.constant 0 : i32
    %0 = arith.cmpi eq, %arg1, %c0_i32 : i32
    %1 = arith.extui %0 : i1 to i32
    %c0_i32_0 = arith.constant 0 : i32
    %2 = arith.cmpi ne, %1, %c0_i32_0 : i32
    scf.if %2 {
      %cst_37 = arith.constant 0xFF800000 : f32
      %44 = vector.broadcast %cst_37 : f32 to vector<4x8x1xf32>
      %c0_38 = arith.constant 0 : index
      %c0_39 = arith.constant 0 : index
      %c0_40 = arith.constant 0 : index
      %45 = vector.load %arg6[%c0_38, %c0_39, %c0_40] : memref<4x8x1xf32, #tpu.memory_space<vmem>>, vector<4x8x1xf32>
      tpu.vector_store %arg6[%c0_38, %c0_39, %c0_40], %44 {strides = array<i32>} : memref<4x8x1xf32, #tpu.memory_space<vmem>>, vector<4x8x1xf32>,
      %cst_41 = arith.constant 0.000000e+00 : f32
      %46 = vector.broadcast %cst_41 : f32 to vector<4x8x1xf32>
      %c0_42 = arith.constant 0 : index
      %c0_43 = arith.constant 0 : index
      %c0_44 = arith.constant 0 : index
      %47 = vector.load %arg7[%c0_42, %c0_43, %c0_44] : memref<4x8x1xf32, #tpu.memory_space<vmem>>, vector<4x8x1xf32>
      tpu.vector_store %arg7[%c0_42, %c0_43, %c0_44], %46 {strides = array<i32>} : memref<4x8x1xf32, #tpu.memory_space<vmem>>, vector<4x8x1xf32>,
      %cst_45 = arith.constant 0.000000e+00 : f32
      %48 = vector.broadcast %cst_45 : f32 to vector<4x8x8xf32>
      %c0_46 = arith.constant 0 : index
      %c0_47 = arith.constant 0 : index
      %c0_48 = arith.constant 0 : index
      %49 = vector.load %arg8[%c0_46, %c0_47, %c0_48] : memref<4x8x8xf32, #tpu.memory_space<vmem>>, vector<4x8x8xf32>
      tpu.vector_store %arg8[%c0_46, %c0_47, %c0_48], %48 {strides = array<i32>} : memref<4x8x8xf32, #tpu.memory_space<vmem>>, vector<4x8x8xf32>,
    } else {
    }
    %c0 = arith.constant 0 : index
    %c0_1 = arith.constant 0 : index
    %c0_2 = arith.constant 0 : index
    %3 = vector.load %arg2[%c0, %c0_1, %c0_2] : memref<4x8x8xbf16, #tpu.memory_space<vmem>>, vector<4x8x8xbf16>
    %c0_3 = arith.constant 0 : index
    %c0_4 = arith.constant 0 : index
    %c0_5 = arith.constant 0 : index
    %4 = vector.load %arg3[%c0_3, %c0_4, %c0_5] : memref<4x8x8xbf16, #tpu.memory_space<vmem>>, vector<4x8x8xbf16>
    "tpu.trace_start"() <{level = 10 : i32, message = "bqd,bkd->bqk"}> : () -> ()
    %cst = arith.constant dense<0.000000e+00> : vector<4x8x8xf32>
    %5 = tpu.matmul %3, %4, %cst {dimension_numbers = #tpu.dot_dimension_numbers<[2], [2], [1], [1], [0, 0, 0, 1, 1, 1], [0], [0]>} : vector<4x8x8xbf16>, vector<4x8x8xbf16>, vector<4x8x8xf32> -> vector<4x8x8xf32>
    "tpu.trace_stop"() : () -> ()
    %cst_6 = arith.constant 0.353553385 : f32
    %6 = vector.broadcast %cst_6 : f32 to vector<4x8x8xf32>
    %7 = arith.mulf %5, %6 : vector<4x8x8xf32>
    %8 = tpu.iota {dimensions = array<i32: 1>} : vector<4x8x8xi32>
    %9 = tpu.iota {dimensions = array<i32: 2>} : vector<4x8x8xi32>
    %c8_i32 = arith.constant 8 : i32
    %10 = arith.muli %arg1, %c8_i32 : i32
    %11 = vector.broadcast %10 : i32 to vector<4x8x8xi32>
    %12 = arith.addi %9, %11 : vector<4x8x8xi32>
    %13 = arith.cmpi sle, %12, %8 : vector<4x8x8xi32>
    %cst_7 = arith.constant -1.000000e+30 : f32
    %14 = vector.broadcast %cst_7 : f32 to vector<4x8x8xf32>
    %15 = arith.select %13, %7, %14 : vector<4x8x8xi1>, vector<4x8x8xf32>
    %c0_8 = arith.constant 0 : index
    %c0_9 = arith.constant 0 : index
    %c0_10 = arith.constant 0 : index
    %16 = vector.load %arg6[%c0_8, %c0_9, %c0_10] : memref<4x8x1xf32, #tpu.memory_space<vmem>>, vector<4x8x1xf32>
    %cst_11 = arith.constant dense<0xFF800000> : vector<4x8xf32>
    %17 = vector.multi_reduction <maximumf>, %15, %cst_11 [2] : vector<4x8x8xf32> to vector<4x8xf32>
    %18 = vector.shape_cast %17 : vector<4x8xf32> to vector<4x8x1xf32>
    %19 = arith.maximumf %16, %18 : vector<4x8x1xf32>
    %c0_12 = arith.constant 0 : index
    %c0_13 = arith.constant 0 : index
    %c0_14 = arith.constant 0 : index
    %20 = vector.load %arg6[%c0_12, %c0_13, %c0_14] : memref<4x8x1xf32, #tpu.memory_space<vmem>>, vector<4x8x1xf32>
    %21 = arith.subf %20, %19 : vector<4x8x1xf32>
    %22 = math.exp %21 : vector<4x8x1xf32>
    %23 = vector.broadcast %19 : vector<4x8x1xf32> to vector<4x8x8xf32>
    %24 = arith.subf %15, %23 : vector<4x8x8xf32>
    %25 = math.exp %24 : vector<4x8x8xf32>
    %c0_15 = arith.constant 0 : index
    %c0_16 = arith.constant 0 : index
    %c0_17 = arith.constant 0 : index
    %26 = vector.load %arg7[%c0_15, %c0_16, %c0_17] : memref<4x8x1xf32, #tpu.memory_space<vmem>>, vector<4x8x1xf32>
    %27 = arith.mulf %22, %26 : vector<4x8x1xf32>
    %cst_18 = arith.constant dense<0.000000e+00> : vector<4x8xf32>
    %28 = vector.multi_reduction <add>, %25, %cst_18 [2] : vector<4x8x8xf32> to vector<4x8xf32>
    %29 = vector.shape_cast %28 : vector<4x8xf32> to vector<4x8x1xf32>
    %30 = arith.addf %27, %29 : vector<4x8x1xf32>
    %c0_19 = arith.constant 0 : index
    %c0_20 = arith.constant 0 : index
    %c0_21 = arith.constant 0 : index
    %31 = vector.load %arg7[%c0_19, %c0_20, %c0_21] : memref<4x8x1xf32, #tpu.memory_space<vmem>>, vector<4x8x1xf32>
    tpu.vector_store %arg7[%c0_19, %c0_20, %c0_21], %30 {strides = array<i32>} : memref<4x8x1xf32, #tpu.memory_space<vmem>>, vector<4x8x1xf32>,
    %c0_22 = arith.constant 0 : index
    %c0_23 = arith.constant 0 : index
    %c0_24 = arith.constant 0 : index
    %32 = vector.load %arg8[%c0_22, %c0_23, %c0_24] : memref<4x8x8xf32, #tpu.memory_space<vmem>>, vector<4x8x8xf32>
    %33 = vector.broadcast %22 : vector<4x8x1xf32> to vector<4x8x8xf32>
    %34 = arith.mulf %33, %32 : vector<4x8x8xf32>
    %35 = arith.truncf %25 : vector<4x8x8xf32> to vector<4x8x8xbf16>
    %c0_25 = arith.constant 0 : index
    %c0_26 = arith.constant 0 : index
    %c0_27 = arith.constant 0 : index
    %36 = vector.load %arg4[%c0_25, %c0_26, %c0_27] : memref<4x8x8xbf16, #tpu.memory_space<vmem>>, vector<4x8x8xbf16>
    "tpu.trace_start"() <{level = 10 : i32, message = "bqk,bkd->bqd"}> : () -> ()
    %cst_28 = arith.constant dense<0.000000e+00> : vector<4x8x8xf32>
    %37 = tpu.matmul %35, %36, %cst_28 {dimension_numbers = #tpu.dot_dimension_numbers<[2], [1], [1], [2], [0, 0, 0, 1, 1, 2], [0], [0]>} : vector<4x8x8xbf16>, vector<4x8x8xbf16>, vector<4x8x8xf32> -> vector<4x8x8xf32>
    "tpu.trace_stop"() : () -> ()
    %38 = arith.addf %34, %37 : vector<4x8x8xf32>
    %c0_29 = arith.constant 0 : index
    %c0_30 = arith.constant 0 : index
    %c0_31 = arith.constant 0 : index
    %39 = vector.load %arg8[%c0_29, %c0_30, %c0_31] : memref<4x8x8xf32, #tpu.memory_space<vmem>>, vector<4x8x8xf32>
    tpu.vector_store %arg8[%c0_29, %c0_30, %c0_31], %38 {strides = array<i32>} : memref<4x8x8xf32, #tpu.memory_space<vmem>>, vector<4x8x8xf32>,
    %c0_32 = arith.constant 0 : index
    %c0_33 = arith.constant 0 : index
    %c0_34 = arith.constant 0 : index
    %40 = vector.load %arg6[%c0_32, %c0_33, %c0_34] : memref<4x8x1xf32, #tpu.memory_space<vmem>>, vector<4x8x1xf32>
    tpu.vector_store %arg6[%c0_32, %c0_33, %c0_34], %19 {strides = array<i32>} : memref<4x8x1xf32, #tpu.memory_space<vmem>>, vector<4x8x1xf32>,
    %c0_i32_35 = arith.constant 0 : i32
    %41 = arith.cmpi eq, %arg1, %c0_i32_35 : i32
    %42 = arith.extui %41 : i1 to i32
    %c0_i32_36 = arith.constant 0 : i32
    %43 = arith.cmpi ne, %42, %c0_i32_36 : i32
    scf.if %43 {
      %c0_37 = arith.constant 0 : index
      %c0_38 = arith.constant 0 : index
      %c0_39 = arith.constant 0 : index
      %44 = vector.load %arg8[%c0_37, %c0_38, %c0_39] : memref<4x8x8xf32, #tpu.memory_space<vmem>>, vector<4x8x8xf32>
      %c0_40 = arith.constant 0 : index
      %c0_41 = arith.constant 0 : index
      %c0_42 = arith.constant 0 : index
      %45 = vector.load %arg7[%c0_40, %c0_41, %c0_42] : memref<4x8x1xf32, #tpu.memory_space<vmem>>, vector<4x8x1xf32>
      %46 = tpu.reciprocal %45 {approx = true} : vector<4x8x1xf32> -> vector<4x8x1xf32>
      %47 = vector.broadcast %46 : vector<4x8x1xf32> to vector<4x8x8xf32>
      %48 = arith.mulf %44, %47 : vector<4x8x8xf32>
      %49 = arith.truncf %48 : vector<4x8x8xf32> to vector<4x8x8xbf16>
      %c0_43 = arith.constant 0 : index
      %c0_44 = arith.constant 0 : index
      %c0_45 = arith.constant 0 : index
      %50 = vector.load %arg5[%c0_43, %c0_44, %c0_45] : memref<4x8x8xbf16, #tpu.memory_space<vmem>>, vector<4x8x8xbf16>
      tpu.vector_store %arg5[%c0_43, %c0_44, %c0_45], %49 {strides = array<i32>} : memref<4x8x8xbf16, #tpu.memory_space<vmem>>, vector<4x8x8xbf16>,
    } else {
    }
    return
  }
  func.func @transform_0(%arg0: i32, %arg1: i32) -> (i32, i32, i32) {
    %c0_i32 = arith.constant 0 : i32
    %c0_i32_0 = arith.constant 0 : i32
    %c0_i32_1 = arith.constant 0 : i32
    return %arg0, %c0_i32, %c0_i32_0 : i32, i32, i32
  }
  func.func @transform_1(%arg0: i32, %arg1: i32) -> (i32, i32, i32) {
    %c0_i32 = arith.constant 0 : i32
    %c0_i32_0 = arith.constant 0 : i32
    return %arg0, %arg1, %c0_i32 : i32, i32, i32
  }
  func.func @transform_2(%arg0: i32, %arg1: i32) -> (i32, i32, i32) {
    %c0_i32 = arith.constant 0 : i32
    %c0_i32_0 = arith.constant 0 : i32
    return %arg0, %arg1, %c0_i32 : i32, i32, i32
  }
  func.func @transform_3(%arg0: i32, %arg1: i32) -> (i32, i32, i32) {
    %c0_i32 = arith.constant 0 : i32
    %c0_i32_0 = arith.constant 0 : i32
    %c0_i32_1 = arith.constant 0 : i32
    return %arg0, %c0_i32, %c0_i32_0 : i32, i32, i32
  }
}

module attributes {stable_mosaic.version = 11 : i64} {
  func.func @_linear_kernel(%arg0: i32, %arg1: i32, %arg2: i32, %arg3: memref<16x32xbf16, #tpu.memory_space<vmem>>, %arg4: memref<32x32xbf16, #tpu.memory_space<vmem>>, %arg5: memref<1x32xf32, #tpu.memory_space<vmem>>, %arg6: memref<16x32xbf16, #tpu.memory_space<vmem>>, %arg7: memref<16x32xf32, #tpu.memory_space<vmem>>) attributes {dimension_semantics = [#tpu.dimension_semantics<parallel>, #tpu.dimension_semantics<parallel>, #tpu.dimension_semantics<arbitrary>], iteration_bounds = array<i64: 1, 1, 1>, scalar_prefetch = 0 : i64, scratch_operands = 1 : i64, tpu.core_type = #tpu.core_type<tc>, window_params = [{transform_indices = @transform_0, window_bounds = array<i64: 16, 32>}, {transform_indices = @transform_1, window_bounds = array<i64: 32, 32>}, {transform_indices = @transform_2, window_bounds = array<i64: 1, 32>}, {transform_indices = @transform_3, window_bounds = array<i64: 16, 32>}]} {
    %c0_i32 = arith.constant 0 : i32
    %0 = arith.cmpi eq, %arg2, %c0_i32 : i32
    %1 = arith.extui %0 : i1 to i32
    %c0_i32_0 = arith.constant 0 : i32
    %2 = arith.cmpi ne, %1, %c0_i32_0 : i32
    scf.if %2 {
      %cst_10 = arith.constant 0.000000e+00 : f32
      %12 = vector.broadcast %cst_10 : f32 to vector<16x32xf32>
      %c0_11 = arith.constant 0 : index
      %c0_12 = arith.constant 0 : index
      %13 = vector.load %arg7[%c0_11, %c0_12] : memref<16x32xf32, #tpu.memory_space<vmem>>, vector<16x32xf32>
      tpu.vector_store %arg7[%c0_11, %c0_12], %12 {strides = array<i32>} : memref<16x32xf32, #tpu.memory_space<vmem>>, vector<16x32xf32>,
    } else {
    }
    %c0 = arith.constant 0 : index
    %c0_1 = arith.constant 0 : index
    %3 = vector.load %arg7[%c0, %c0_1] : memref<16x32xf32, #tpu.memory_space<vmem>>, vector<16x32xf32>
    %c0_2 = arith.constant 0 : index
    %c0_3 = arith.constant 0 : index
    %4 = vector.load %arg3[%c0_2, %c0_3] : memref<16x32xbf16, #tpu.memory_space<vmem>>, vector<16x32xbf16>
    %c0_4 = arith.constant 0 : index
    %c0_5 = arith.constant 0 : index
    %5 = vector.load %arg4[%c0_4, %c0_5] : memref<32x32xbf16, #tpu.memory_space<vmem>>, vector<32x32xbf16>
    %cst = arith.constant dense<0.000000e+00> : vector<16x32xf32>
    %6 = tpu.matmul %4, %5, %cst {dimension_numbers = #tpu.dot_dimension_numbers<[1], [0], [0], [1], [0, 0, 1, 1], [], []>} : vector<16x32xbf16>, vector<32x32xbf16>, vector<16x32xf32> -> vector<16x32xf32>
    %7 = arith.addf %3, %6 : vector<16x32xf32>
    %c0_6 = arith.constant 0 : index
    %c0_7 = arith.constant 0 : index
    %8 = vector.load %arg7[%c0_6, %c0_7] : memref<16x32xf32, #tpu.memory_space<vmem>>, vector<16x32xf32>
    tpu.vector_store %arg7[%c0_6, %c0_7], %7 {strides = array<i32>} : memref<16x32xf32, #tpu.memory_space<vmem>>, vector<16x32xf32>,
    %c0_i32_8 = arith.constant 0 : i32
    %9 = arith.cmpi eq, %arg2, %c0_i32_8 : i32
    %10 = arith.extui %9 : i1 to i32
    %c0_i32_9 = arith.constant 0 : i32
    %11 = arith.cmpi ne, %10, %c0_i32_9 : i32
    scf.if %11 {
      %c0_10 = arith.constant 0 : index
      %c0_11 = arith.constant 0 : index
      %12 = vector.load %arg7[%c0_10, %c0_11] : memref<16x32xf32, #tpu.memory_space<vmem>>, vector<16x32xf32>
      %c0_12 = arith.constant 0 : index
      %c0_13 = arith.constant 0 : index
      %13 = vector.load %arg5[%c0_12, %c0_13] : memref<1x32xf32, #tpu.memory_space<vmem>>, vector<1x32xf32>
      %14 = vector.broadcast %13 : vector<1x32xf32> to vector<16x32xf32>
      %15 = arith.addf %12, %14 : vector<16x32xf32>
      %16 = arith.truncf %15 : vector<16x32xf32> to vector<16x32xbf16>
      %c0_14 = arith.constant 0 : index
      %c0_15 = arith.constant 0 : index
      %17 = vector.load %arg6[%c0_14, %c0_15] : memref<16x32xbf16, #tpu.memory_space<vmem>>, vector<16x32xbf16>
      tpu.vector_store %arg6[%c0_14, %c0_15], %16 {strides = array<i32>} : memref<16x32xbf16, #tpu.memory_space<vmem>>, vector<16x32xbf16>,
    } else {
    }
    return
  }
  func.func @transform_0(%arg0: i32, %arg1: i32, %arg2: i32) -> (i32, i32) {
    %c0_i32 = arith.constant 0 : i32
    return %arg0, %arg2 : i32, i32
  }
  func.func @transform_1(%arg0: i32, %arg1: i32, %arg2: i32) -> (i32, i32) {
    %c0_i32 = arith.constant 0 : i32
    return %arg2, %arg1 : i32, i32
  }
  func.func @transform_2(%arg0: i32, %arg1: i32, %arg2: i32) -> (i32, i32) {
    %c0_i32 = arith.constant 0 : i32
    %c0_i32_0 = arith.constant 0 : i32
    return %c0_i32, %arg1 : i32, i32
  }
  func.func @transform_3(%arg0: i32, %arg1: i32, %arg2: i32) -> (i32, i32) {
    %c0_i32 = arith.constant 0 : i32
    return %arg0, %arg1 : i32, i32
  }
}

module attributes {stable_mosaic.version = 11 : i64} {
  func.func @_layernorm_kernel(%arg0: i32, %arg1: memref<16x32xbf16, #tpu.memory_space<vmem>>, %arg2: memref<16x32xbf16, #tpu.memory_space<vmem>>, %arg3: memref<1x32xf32, #tpu.memory_space<vmem>>, %arg4: memref<1x32xf32, #tpu.memory_space<vmem>>, %arg5: memref<16x32xbf16, #tpu.memory_space<vmem>>) attributes {dimension_semantics = [#tpu.dimension_semantics<parallel>], iteration_bounds = array<i64: 1>, scalar_prefetch = 0 : i64, scratch_operands = 0 : i64, tpu.core_type = #tpu.core_type<tc>, window_params = [{transform_indices = @transform_0, window_bounds = array<i64: 16, 32>}, {transform_indices = @transform_1, window_bounds = array<i64: 16, 32>}, {pipeline_mode = #tpu.pipeline_mode<synchronous>, transform_indices = @transform_2, window_bounds = array<i64: 1, 32>}, {pipeline_mode = #tpu.pipeline_mode<synchronous>, transform_indices = @transform_3, window_bounds = array<i64: 1, 32>}, {transform_indices = @transform_4, window_bounds = array<i64: 16, 32>}]} {
    %c0 = arith.constant 0 : index
    %c0_0 = arith.constant 0 : index
    %0 = vector.load %arg1[%c0, %c0_0] : memref<16x32xbf16, #tpu.memory_space<vmem>>, vector<16x32xbf16>
    %1 = arith.extf %0 : vector<16x32xbf16> to vector<16x32xf32>
    %c0_1 = arith.constant 0 : index
    %c0_2 = arith.constant 0 : index
    %2 = vector.load %arg2[%c0_1, %c0_2] : memref<16x32xbf16, #tpu.memory_space<vmem>>, vector<16x32xbf16>
    %3 = arith.extf %2 : vector<16x32xbf16> to vector<16x32xf32>
    %4 = arith.addf %1, %3 : vector<16x32xf32>
    %cst = arith.constant dense<0.000000e+00> : vector<16xf32>
    %5 = vector.multi_reduction <add>, %4, %cst [1] : vector<16x32xf32> to vector<16xf32>
    %6 = vector.shape_cast %5 : vector<16xf32> to vector<16x1xf32>
    %7 = arith.mulf %4, %4 : vector<16x32xf32>
    %cst_3 = arith.constant dense<0.000000e+00> : vector<16xf32>
    %8 = vector.multi_reduction <add>, %7, %cst_3 [1] : vector<16x32xf32> to vector<16xf32>
    %9 = vector.shape_cast %8 : vector<16xf32> to vector<16x1xf32>
    %cst_4 = arith.constant 3.125000e-02 : f32
    %10 = vector.broadcast %cst_4 : f32 to vector<16x1xf32>
    %11 = arith.mulf %6, %10 : vector<16x1xf32>
    %cst_5 = arith.constant 3.125000e-02 : f32
    %12 = vector.broadcast %cst_5 : f32 to vector<16x1xf32>
    %13 = arith.mulf %9, %12 : vector<16x1xf32>
    %14 = arith.mulf %11, %11 : vector<16x1xf32>
    %15 = arith.subf %13, %14 : vector<16x1xf32>
    %cst_6 = arith.constant 0.000000e+00 : f32
    %16 = vector.broadcast %cst_6 : f32 to vector<16x1xf32>
    %17 = arith.maximumf %15, %16 : vector<16x1xf32>
    %18 = vector.broadcast %11 : vector<16x1xf32> to vector<16x32xf32>
    %19 = arith.subf %4, %18 : vector<16x32xf32>
    %cst_7 = arith.constant 9.99999974E-6 : f32
    %20 = vector.broadcast %cst_7 : f32 to vector<16x1xf32>
    %21 = arith.addf %17, %20 : vector<16x1xf32>
    %22 = math.rsqrt %21 : vector<16x1xf32>
    %23 = vector.broadcast %22 : vector<16x1xf32> to vector<16x32xf32>
    %24 = arith.mulf %19, %23 : vector<16x32xf32>
    %c0_8 = arith.constant 0 : index
    %c0_9 = arith.constant 0 : index
    %25 = vector.load %arg3[%c0_8, %c0_9] : memref<1x32xf32, #tpu.memory_space<vmem>>, vector<1x32xf32>
    %26 = vector.broadcast %25 : vector<1x32xf32> to vector<16x32xf32>
    %27 = arith.mulf %24, %26 : vector<16x32xf32>
    %c0_10 = arith.constant 0 : index
    %c0_11 = arith.constant 0 : index
    %28 = vector.load %arg4[%c0_10, %c0_11] : memref<1x32xf32, #tpu.memory_space<vmem>>, vector<1x32xf32>
    %29 = vector.broadcast %28 : vector<1x32xf32> to vector<16x32xf32>
    %30 = arith.addf %27, %29 : vector<16x32xf32>
    %31 = arith.truncf %30 : vector<16x32xf32> to vector<16x32xbf16>
    %c0_12 = arith.constant 0 : index
    %c0_13 = arith.constant 0 : index
    %32 = vector.load %arg5[%c0_12, %c0_13] : memref<16x32xbf16, #tpu.memory_space<vmem>>, vector<16x32xbf16>
    tpu.vector_store %arg5[%c0_12, %c0_13], %31 {strides = array<i32>} : memref<16x32xbf16, #tpu.memory_space<vmem>>, vector<16x32xbf16>,
    return
  }
  func.func @transform_0(%arg0: i32) -> (i32, i32) {
    %c0_i32 = arith.constant 0 : i32
    %c0_i32_0 = arith.constant 0 : i32
    return %arg0, %c0_i32 : i32, i32
  }
  func.func @transform_1(%arg0: i32) -> (i32, i32) {
    %c0_i32 = arith.constant 0 : i32
    %c0_i32_0 = arith.constant 0 : i32
    return %arg0, %c0_i32 : i32, i32
  }
  func.func @transform_2(%arg0: i32) -> (i32, i32) {
    %c0_i32 = arith.constant 0 : i32
    %c0_i32_0 = arith.constant 0 : i32
    %c0_i32_1 = arith.constant 0 : i32
    return %c0_i32, %c0_i32_0 : i32, i32
  }
  func.func @transform_3(%arg0: i32) -> (i32, i32) {
    %c0_i32 = arith.constant 0 : i32
    %c0_i32_0 = arith.constant 0 : i32
    %c0_i32_1 = arith.constant 0 : i32
    return %c0_i32, %c0_i32_0 : i32, i32
  }
  func.func @transform_4(%arg0: i32) -> (i32, i32) {
    %c0_i32 = arith.constant 0 : i32
    %c0_i32_0 = arith.constant 0 : i32
    return %arg0, %c0_i32 : i32, i32
  }
}

module attributes {stable_mosaic.version = 11 : i64} {
  func.func @_flash_attn_kernel(%arg0: i32, %arg1: i32, %arg2: memref<4x8x8xbf16, #tpu.memory_space<vmem>>, %arg3: memref<4x8x8xbf16, #tpu.memory_space<vmem>>, %arg4: memref<4x8x8xbf16, #tpu.memory_space<vmem>>, %arg5: memref<4x8x8xbf16, #tpu.memory_space<vmem>>, %arg6: memref<4x8x1xf32, #tpu.memory_space<vmem>>, %arg7: memref<4x8x1xf32, #tpu.memory_space<vmem>>, %arg8: memref<4x8x8xf32, #tpu.memory_space<vmem>>) attributes {dimension_semantics = [#tpu.dimension_semantics<parallel>, #tpu.dimension_semantics<arbitrary>], iteration_bounds = array<i64: 2, 1>, scalar_prefetch = 0 : i64, scratch_operands = 3 : i64, tpu.core_type = #tpu.core_type<tc>, window_params = [{transform_indices = @transform_0, window_bounds = array<i64: 4, 8, 8>}, {transform_indices = @transform_1, window_bounds = array<i64: 4, 8, 8>}, {transform_indices = @transform_2, window_bounds = array<i64: 4, 8, 8>}, {transform_indices = @transform_3, window_bounds = array<i64: 4, 8, 8>}]} {
    %c0_i32 = arith.constant 0 : i32
    %0 = arith.cmpi eq, %arg1, %c0_i32 : i32
    %1 = arith.extui %0 : i1 to i32
    %c0_i32_0 = arith.constant 0 : i32
    %2 = arith.cmpi ne, %1, %c0_i32_0 : i32
    scf.if %2 {
      %cst_36 = arith.constant 0xFF800000 : f32
      %36 = vector.broadcast %cst_36 : f32 to vector<4x8x1xf32>
      %c0_37 = arith.constant 0 : index
      %c0_38 = arith.constant 0 : index
      %c0_39 = arith.constant 0 : index
      %37 = vector.load %arg6[%c0_37, %c0_38, %c0_39] : memref<4x8x1xf32, #tpu.memory_space<vmem>>, vector<4x8x1xf32>
      tpu.vector_store %arg6[%c0_37, %c0_38, %c0_39], %36 {strides = array<i32>} : memref<4x8x1xf32, #tpu.memory_space<vmem>>, vector<4x8x1xf32>,
      %cst_40 = arith.constant 0.000000e+00 : f32
      %38 = vector.broadcast %cst_40 : f32 to vector<4x8x1xf32>
      %c0_41 = arith.constant 0 : index
      %c0_42 = arith.constant 0 : index
      %c0_43 = arith.constant 0 : index
      %39 = vector.load %arg7[%c0_41, %c0_42, %c0_43] : memref<4x8x1xf32, #tpu.memory_space<vmem>>, vector<4x8x1xf32>
      tpu.vector_store %arg7[%c0_41, %c0_42, %c0_43], %38 {strides = array<i32>} : memref<4x8x1xf32, #tpu.memory_space<vmem>>, vector<4x8x1xf32>,
      %cst_44 = arith.constant 0.000000e+00 : f32
      %40 = vector.broadcast %cst_44 : f32 to vector<4x8x8xf32>
      %c0_45 = arith.constant 0 : index
      %c0_46 = arith.constant 0 : index
      %c0_47 = arith.constant 0 : index
      %41 = vector.load %arg8[%c0_45, %c0_46, %c0_47] : memref<4x8x8xf32, #tpu.memory_space<vmem>>, vector<4x8x8xf32>
      tpu.vector_store %arg8[%c0_45, %c0_46, %c0_47], %40 {strides = array<i32>} : memref<4x8x8xf32, #tpu.memory_space<vmem>>, vector<4x8x8xf32>,
    } else {
    }
    %c0 = arith.constant 0 : index
    %c0_1 = arith.constant 0 : index
    %c0_2 = arith.constant 0 : index
    %3 = vector.load %arg2[%c0, %c0_1, %c0_2] : memref<4x8x8xbf16, #tpu.memory_space<vmem>>, vector<4x8x8xbf16>
    %c0_3 = arith.constant 0 : index
    %c0_4 = arith.constant 0 : index
    %c0_5 = arith.constant 0 : index
    %4 = vector.load %arg3[%c0_3, %c0_4, %c0_5] : memref<4x8x8xbf16, #tpu.memory_space<vmem>>, vector<4x8x8xbf16>
    "tpu.trace_start"() <{level = 10 : i32, message = "bqd,bkd->bqk"}> : () -> ()
    %cst = arith.constant dense<0.000000e+00> : vector<4x8x8xf32>
    %5 = tpu.matmul %3, %4, %cst {dimension_numbers = #tpu.dot_dimension_numbers<[2], [2], [1], [1], [0, 0, 0, 1, 1, 1], [0], [0]>} : vector<4x8x8xbf16>, vector<4x8x8xbf16>, vector<4x8x8xf32> -> vector<4x8x8xf32>
    "tpu.trace_stop"() : () -> ()
    %cst_6 = arith.constant 0.353553385 : f32
    %6 = vector.broadcast %cst_6 : f32 to vector<4x8x8xf32>
    %7 = arith.mulf %5, %6 : vector<4x8x8xf32>
    %c0_7 = arith.constant 0 : index
    %c0_8 = arith.constant 0 : index
    %c0_9 = arith.constant 0 : index
    %8 = vector.load %arg6[%c0_7, %c0_8, %c0_9] : memref<4x8x1xf32, #tpu.memory_space<vmem>>, vector<4x8x1xf32>
    %cst_10 = arith.constant dense<0xFF800000> : vector<4x8xf32>
    %9 = vector.multi_reduction <maximumf>, %7, %cst_10 [2] : vector<4x8x8xf32> to vector<4x8xf32>
    %10 = vector.shape_cast %9 : vector<4x8xf32> to vector<4x8x1xf32>
    %11 = arith.maximumf %8, %10 : vector<4x8x1xf32>
    %c0_11 = arith.constant 0 : index
    %c0_12 = arith.constant 0 : index
    %c0_13 = arith.constant 0 : index
    %12 = vector.load %arg6[%c0_11, %c0_12, %c0_13] : memref<4x8x1xf32, #tpu.memory_space<vmem>>, vector<4x8x1xf32>
    %13 = arith.subf %12, %11 : vector<4x8x1xf32>
    %14 = math.exp %13 : vector<4x8x1xf32>
    %15 = vector.broadcast %11 : vector<4x8x1xf32> to vector<4x8x8xf32>
    %16 = arith.subf %7, %15 : vector<4x8x8xf32>
    %17 = math.exp %16 : vector<4x8x8xf32>
    %c0_14 = arith.constant 0 : index
    %c0_15 = arith.constant 0 : index
    %c0_16 = arith.constant 0 : index
    %18 = vector.load %arg7[%c0_14, %c0_15, %c0_16] : memref<4x8x1xf32, #tpu.memory_space<vmem>>, vector<4x8x1xf32>
    %19 = arith.mulf %14, %18 : vector<4x8x1xf32>
    %cst_17 = arith.constant dense<0.000000e+00> : vector<4x8xf32>
    %20 = vector.multi_reduction <add>, %17, %cst_17 [2] : vector<4x8x8xf32> to vector<4x8xf32>
    %21 = vector.shape_cast %20 : vector<4x8xf32> to vector<4x8x1xf32>
    %22 = arith.addf %19, %21 : vector<4x8x1xf32>
    %c0_18 = arith.constant 0 : index
    %c0_19 = arith.constant 0 : index
    %c0_20 = arith.constant 0 : index
    %23 = vector.load %arg7[%c0_18, %c0_19, %c0_20] : memref<4x8x1xf32, #tpu.memory_space<vmem>>, vector<4x8x1xf32>
    tpu.vector_store %arg7[%c0_18, %c0_19, %c0_20], %22 {strides = array<i32>} : memref<4x8x1xf32, #tpu.memory_space<vmem>>, vector<4x8x1xf32>,
    %c0_21 = arith.constant 0 : index
    %c0_22 = arith.constant 0 : index
    %c0_23 = arith.constant 0 : index
    %24 = vector.load %arg8[%c0_21, %c0_22, %c0_23] : memref<4x8x8xf32, #tpu.memory_space<vmem>>, vector<4x8x8xf32>
    %25 = vector.broadcast %14 : vector<4x8x1xf32> to vector<4x8x8xf32>
    %26 = arith.mulf %25, %24 : vector<4x8x8xf32>
    %27 = arith.truncf %17 : vector<4x8x8xf32> to vector<4x8x8xbf16>
    %c0_24 = arith.constant 0 : index
    %c0_25 = arith.constant 0 : index
    %c0_26 = arith.constant 0 : index
    %28 = vector.load %arg4[%c0_24, %c0_25, %c0_26] : memref<4x8x8xbf16, #tpu.memory_space<vmem>>, vector<4x8x8xbf16>
    "tpu.trace_start"() <{level = 10 : i32, message = "bqk,bkd->bqd"}> : () -> ()
    %cst_27 = arith.constant dense<0.000000e+00> : vector<4x8x8xf32>
    %29 = tpu.matmul %27, %28, %cst_27 {dimension_numbers = #tpu.dot_dimension_numbers<[2], [1], [1], [2], [0, 0, 0, 1, 1, 2], [0], [0]>} : vector<4x8x8xbf16>, vector<4x8x8xbf16>, vector<4x8x8xf32> -> vector<4x8x8xf32>
    "tpu.trace_stop"() : () -> ()
    %30 = arith.addf %26, %29 : vector<4x8x8xf32>
    %c0_28 = arith.constant 0 : index
    %c0_29 = arith.constant 0 : index
    %c0_30 = arith.constant 0 : index
    %31 = vector.load %arg8[%c0_28, %c0_29, %c0_30] : memref<4x8x8xf32, #tpu.memory_space<vmem>>, vector<4x8x8xf32>
    tpu.vector_store %arg8[%c0_28, %c0_29, %c0_30], %30 {strides = array<i32>} : memref<4x8x8xf32, #tpu.memory_space<vmem>>, vector<4x8x8xf32>,
    %c0_31 = arith.constant 0 : index
    %c0_32 = arith.constant 0 : index
    %c0_33 = arith.constant 0 : index
    %32 = vector.load %arg6[%c0_31, %c0_32, %c0_33] : memref<4x8x1xf32, #tpu.memory_space<vmem>>, vector<4x8x1xf32>
    tpu.vector_store %arg6[%c0_31, %c0_32, %c0_33], %11 {strides = array<i32>} : memref<4x8x1xf32, #tpu.memory_space<vmem>>, vector<4x8x1xf32>,
    %c0_i32_34 = arith.constant 0 : i32
    %33 = arith.cmpi eq, %arg1, %c0_i32_34 : i32
    %34 = arith.extui %33 : i1 to i32
    %c0_i32_35 = arith.constant 0 : i32
    %35 = arith.cmpi ne, %34, %c0_i32_35 : i32
    scf.if %35 {
      %c0_36 = arith.constant 0 : index
      %c0_37 = arith.constant 0 : index
      %c0_38 = arith.constant 0 : index
      %36 = vector.load %arg8[%c0_36, %c0_37, %c0_38] : memref<4x8x8xf32, #tpu.memory_space<vmem>>, vector<4x8x8xf32>
      %c0_39 = arith.constant 0 : index
      %c0_40 = arith.constant 0 : index
      %c0_41 = arith.constant 0 : index
      %37 = vector.load %arg7[%c0_39, %c0_40, %c0_41] : memref<4x8x1xf32, #tpu.memory_space<vmem>>, vector<4x8x1xf32>
      %38 = tpu.reciprocal %37 {approx = true} : vector<4x8x1xf32> -> vector<4x8x1xf32>
      %39 = vector.broadcast %38 : vector<4x8x1xf32> to vector<4x8x8xf32>
      %40 = arith.mulf %36, %39 : vector<4x8x8xf32>
      %41 = arith.truncf %40 : vector<4x8x8xf32> to vector<4x8x8xbf16>
      %c0_42 = arith.constant 0 : index
      %c0_43 = arith.constant 0 : index
      %c0_44 = arith.constant 0 : index
      %42 = vector.load %arg5[%c0_42, %c0_43, %c0_44] : memref<4x8x8xbf16, #tpu.memory_space<vmem>>, vector<4x8x8xbf16>
      tpu.vector_store %arg5[%c0_42, %c0_43, %c0_44], %41 {strides = array<i32>} : memref<4x8x8xbf16, #tpu.memory_space<vmem>>, vector<4x8x8xbf16>,
    } else {
    }
    return
  }
  func.func @transform_0(%arg0: i32, %arg1: i32) -> (i32, i32, i32) {
    %c0_i32 = arith.constant 0 : i32
    %c0_i32_0 = arith.constant 0 : i32
    %c0_i32_1 = arith.constant 0 : i32
    return %arg0, %c0_i32, %c0_i32_0 : i32, i32, i32
  }
  func.func @transform_1(%arg0: i32, %arg1: i32) -> (i32, i32, i32) {
    %c0_i32 = arith.constant 0 : i32
    %c0_i32_0 = arith.constant 0 : i32
    return %arg0, %arg1, %c0_i32 : i32, i32, i32
  }
  func.func @transform_2(%arg0: i32, %arg1: i32) -> (i32, i32, i32) {
    %c0_i32 = arith.constant 0 : i32
    %c0_i32_0 = arith.constant 0 : i32
    return %arg0, %arg1, %c0_i32 : i32, i32, i32
  }
  func.func @transform_3(%arg0: i32, %arg1: i32) -> (i32, i32, i32) {
    %c0_i32 = arith.constant 0 : i32
    %c0_i32_0 = arith.constant 0 : i32
    %c0_i32_1 = arith.constant 0 : i32
    return %arg0, %c0_i32, %c0_i32_0 : i32, i32, i32
  }
}

module attributes {stable_mosaic.version = 11 : i64} {
  func.func @_ffn_kernel(%arg0: i32, %arg1: i32, %arg2: memref<16x32xbf16, #tpu.memory_space<vmem>>, %arg3: memref<32x64xbf16, #tpu.memory_space<vmem>>, %arg4: memref<1x64xf32, #tpu.memory_space<vmem>>, %arg5: memref<64x32xbf16, #tpu.memory_space<vmem>>, %arg6: memref<1x32xf32, #tpu.memory_space<vmem>>, %arg7: memref<16x32xbf16, #tpu.memory_space<vmem>>, %arg8: memref<16x32xf32, #tpu.memory_space<vmem>>) attributes {dimension_semantics = [#tpu.dimension_semantics<parallel>, #tpu.dimension_semantics<arbitrary>], iteration_bounds = array<i64: 1, 1>, scalar_prefetch = 0 : i64, scratch_operands = 1 : i64, tpu.core_type = #tpu.core_type<tc>, window_params = [{transform_indices = @transform_0, window_bounds = array<i64: 16, 32>}, {transform_indices = @transform_1, window_bounds = array<i64: 32, 64>}, {transform_indices = @transform_2, window_bounds = array<i64: 1, 64>}, {transform_indices = @transform_3, window_bounds = array<i64: 64, 32>}, {pipeline_mode = #tpu.pipeline_mode<synchronous>, transform_indices = @transform_4, window_bounds = array<i64: 1, 32>}, {transform_indices = @transform_5, window_bounds = array<i64: 16, 32>}]} {
    %c0_i32 = arith.constant 0 : i32
    %0 = arith.cmpi eq, %arg1, %c0_i32 : i32
    %1 = arith.extui %0 : i1 to i32
    %c0_i32_0 = arith.constant 0 : i32
    %2 = arith.cmpi ne, %1, %c0_i32_0 : i32
    scf.if %2 {
      %cst_16 = arith.constant 0.000000e+00 : f32
      %20 = vector.broadcast %cst_16 : f32 to vector<16x32xf32>
      %c0_17 = arith.constant 0 : index
      %c0_18 = arith.constant 0 : index
      %21 = vector.load %arg8[%c0_17, %c0_18] : memref<16x32xf32, #tpu.memory_space<vmem>>, vector<16x32xf32>
      tpu.vector_store %arg8[%c0_17, %c0_18], %20 {strides = array<i32>} : memref<16x32xf32, #tpu.memory_space<vmem>>, vector<16x32xf32>,
    } else {
    }
    %c0 = arith.constant 0 : index
    %c0_1 = arith.constant 0 : index
    %3 = vector.load %arg2[%c0, %c0_1] : memref<16x32xbf16, #tpu.memory_space<vmem>>, vector<16x32xbf16>
    %c0_2 = arith.constant 0 : index
    %c0_3 = arith.constant 0 : index
    %4 = vector.load %arg3[%c0_2, %c0_3] : memref<32x64xbf16, #tpu.memory_space<vmem>>, vector<32x64xbf16>
    %cst = arith.constant dense<0.000000e+00> : vector<16x64xf32>
    %5 = tpu.matmul %3, %4, %cst {dimension_numbers = #tpu.dot_dimension_numbers<[1], [0], [0], [1], [0, 0, 1, 1], [], []>} : vector<16x32xbf16>, vector<32x64xbf16>, vector<16x64xf32> -> vector<16x64xf32>
    %c0_4 = arith.constant 0 : index
    %c0_5 = arith.constant 0 : index
    %6 = vector.load %arg4[%c0_4, %c0_5] : memref<1x64xf32, #tpu.memory_space<vmem>>, vector<1x64xf32>
    %7 = vector.broadcast %6 : vector<1x64xf32> to vector<16x64xf32>
    %8 = arith.addf %5, %7 : vector<16x64xf32>
    %cst_6 = arith.constant 0.000000e+00 : f32
    %9 = vector.broadcast %cst_6 : f32 to vector<16x64xf32>
    %10 = arith.maximumf %8, %9 : vector<16x64xf32>
    %c0_7 = arith.constant 0 : index
    %c0_8 = arith.constant 0 : index
    %11 = vector.load %arg8[%c0_7, %c0_8] : memref<16x32xf32, #tpu.memory_space<vmem>>, vector<16x32xf32>
    %12 = arith.truncf %10 : vector<16x64xf32> to vector<16x64xbf16>
    %c0_9 = arith.constant 0 : index
    %c0_10 = arith.constant 0 : index
    %13 = vector.load %arg5[%c0_9, %c0_10] : memref<64x32xbf16, #tpu.memory_space<vmem>>, vector<64x32xbf16>
    %cst_11 = arith.constant dense<0.000000e+00> : vector<16x32xf32>
    %14 = tpu.matmul %12, %13, %cst_11 {dimension_numbers = #tpu.dot_dimension_numbers<[1], [0], [0], [1], [0, 0, 1, 1], [], []>} : vector<16x64xbf16>, vector<64x32xbf16>, vector<16x32xf32> -> vector<16x32xf32>
    %15 = arith.addf %11, %14 : vector<16x32xf32>
    %c0_12 = arith.constant 0 : index
    %c0_13 = arith.constant 0 : index
    %16 = vector.load %arg8[%c0_12, %c0_13] : memref<16x32xf32, #tpu.memory_space<vmem>>, vector<16x32xf32>
    tpu.vector_store %arg8[%c0_12, %c0_13], %15 {strides = array<i32>} : memref<16x32xf32, #tpu.memory_space<vmem>>, vector<16x32xf32>,
    %c0_i32_14 = arith.constant 0 : i32
    %17 = arith.cmpi eq, %arg1, %c0_i32_14 : i32
    %18 = arith.extui %17 : i1 to i32
    %c0_i32_15 = arith.constant 0 : i32
    %19 = arith.cmpi ne, %18, %c0_i32_15 : i32
    scf.if %19 {
      %c0_16 = arith.constant 0 : index
      %c0_17 = arith.constant 0 : index
      %20 = vector.load %arg8[%c0_16, %c0_17] : memref<16x32xf32, #tpu.memory_space<vmem>>, vector<16x32xf32>
      %c0_18 = arith.constant 0 : index
      %c0_19 = arith.constant 0 : index
      %21 = vector.load %arg6[%c0_18, %c0_19] : memref<1x32xf32, #tpu.memory_space<vmem>>, vector<1x32xf32>
      %22 = vector.broadcast %21 : vector<1x32xf32> to vector<16x32xf32>
      %23 = arith.addf %20, %22 : vector<16x32xf32>
      %24 = arith.truncf %23 : vector<16x32xf32> to vector<16x32xbf16>
      %c0_20 = arith.constant 0 : index
      %c0_21 = arith.constant 0 : index
      %25 = vector.load %arg7[%c0_20, %c0_21] : memref<16x32xbf16, #tpu.memory_space<vmem>>, vector<16x32xbf16>
      tpu.vector_store %arg7[%c0_20, %c0_21], %24 {strides = array<i32>} : memref<16x32xbf16, #tpu.memory_space<vmem>>, vector<16x32xbf16>,
    } else {
    }
    return
  }
  func.func @transform_0(%arg0: i32, %arg1: i32) -> (i32, i32) {
    %c0_i32 = arith.constant 0 : i32
    %c0_i32_0 = arith.constant 0 : i32
    return %arg0, %c0_i32 : i32, i32
  }
  func.func @transform_1(%arg0: i32, %arg1: i32) -> (i32, i32) {
    %c0_i32 = arith.constant 0 : i32
    %c0_i32_0 = arith.constant 0 : i32
    return %c0_i32, %arg1 : i32, i32
  }
  func.func @transform_2(%arg0: i32, %arg1: i32) -> (i32, i32) {
    %c0_i32 = arith.constant 0 : i32
    %c0_i32_0 = arith.constant 0 : i32
    return %c0_i32, %arg1 : i32, i32
  }
  func.func @transform_3(%arg0: i32, %arg1: i32) -> (i32, i32) {
    %c0_i32 = arith.constant 0 : i32
    %c0_i32_0 = arith.constant 0 : i32
    return %arg1, %c0_i32 : i32, i32
  }
  func.func @transform_4(%arg0: i32, %arg1: i32) -> (i32, i32) {
    %c0_i32 = arith.constant 0 : i32
    %c0_i32_0 = arith.constant 0 : i32
    %c0_i32_1 = arith.constant 0 : i32
    return %c0_i32, %c0_i32_0 : i32, i32
  }
  func.func @transform_5(%arg0: i32, %arg1: i32) -> (i32, i32) {
    %c0_i32 = arith.constant 0 : i32
    %c0_i32_0 = arith.constant 0 : i32
    return %arg0, %c0_i32 : i32, i32
  }
}

module attributes {stable_mosaic.version = 11 : i64} {
  func.func @_linear_kernel(%arg0: i32, %arg1: i32, %arg2: i32, %arg3: memref<16x32xbf16, #tpu.memory_space<vmem>>, %arg4: memref<32x64xbf16, #tpu.memory_space<vmem>>, %arg5: memref<1x64xf32, #tpu.memory_space<vmem>>, %arg6: memref<16x64xbf16, #tpu.memory_space<vmem>>, %arg7: memref<16x64xf32, #tpu.memory_space<vmem>>) attributes {dimension_semantics = [#tpu.dimension_semantics<parallel>, #tpu.dimension_semantics<parallel>, #tpu.dimension_semantics<arbitrary>], iteration_bounds = array<i64: 1, 1, 1>, scalar_prefetch = 0 : i64, scratch_operands = 1 : i64, tpu.core_type = #tpu.core_type<tc>, window_params = [{transform_indices = @transform_0, window_bounds = array<i64: 16, 32>}, {transform_indices = @transform_1, window_bounds = array<i64: 32, 64>}, {transform_indices = @transform_2, window_bounds = array<i64: 1, 64>}, {transform_indices = @transform_3, window_bounds = array<i64: 16, 64>}]} {
    %c0_i32 = arith.constant 0 : i32
    %0 = arith.cmpi eq, %arg2, %c0_i32 : i32
    %1 = arith.extui %0 : i1 to i32
    %c0_i32_0 = arith.constant 0 : i32
    %2 = arith.cmpi ne, %1, %c0_i32_0 : i32
    scf.if %2 {
      %cst_10 = arith.constant 0.000000e+00 : f32
      %12 = vector.broadcast %cst_10 : f32 to vector<16x64xf32>
      %c0_11 = arith.constant 0 : index
      %c0_12 = arith.constant 0 : index
      %13 = vector.load %arg7[%c0_11, %c0_12] : memref<16x64xf32, #tpu.memory_space<vmem>>, vector<16x64xf32>
      tpu.vector_store %arg7[%c0_11, %c0_12], %12 {strides = array<i32>} : memref<16x64xf32, #tpu.memory_space<vmem>>, vector<16x64xf32>,
    } else {
    }
    %c0 = arith.constant 0 : index
    %c0_1 = arith.constant 0 : index
    %3 = vector.load %arg7[%c0, %c0_1] : memref<16x64xf32, #tpu.memory_space<vmem>>, vector<16x64xf32>
    %c0_2 = arith.constant 0 : index
    %c0_3 = arith.constant 0 : index
    %4 = vector.load %arg3[%c0_2, %c0_3] : memref<16x32xbf16, #tpu.memory_space<vmem>>, vector<16x32xbf16>
    %c0_4 = arith.constant 0 : index
    %c0_5 = arith.constant 0 : index
    %5 = vector.load %arg4[%c0_4, %c0_5] : memref<32x64xbf16, #tpu.memory_space<vmem>>, vector<32x64xbf16>
    %cst = arith.constant dense<0.000000e+00> : vector<16x64xf32>
    %6 = tpu.matmul %4, %5, %cst {dimension_numbers = #tpu.dot_dimension_numbers<[1], [0], [0], [1], [0, 0, 1, 1], [], []>} : vector<16x32xbf16>, vector<32x64xbf16>, vector<16x64xf32> -> vector<16x64xf32>
    %7 = arith.addf %3, %6 : vector<16x64xf32>
    %c0_6 = arith.constant 0 : index
    %c0_7 = arith.constant 0 : index
    %8 = vector.load %arg7[%c0_6, %c0_7] : memref<16x64xf32, #tpu.memory_space<vmem>>, vector<16x64xf32>
    tpu.vector_store %arg7[%c0_6, %c0_7], %7 {strides = array<i32>} : memref<16x64xf32, #tpu.memory_space<vmem>>, vector<16x64xf32>,
    %c0_i32_8 = arith.constant 0 : i32
    %9 = arith.cmpi eq, %arg2, %c0_i32_8 : i32
    %10 = arith.extui %9 : i1 to i32
    %c0_i32_9 = arith.constant 0 : i32
    %11 = arith.cmpi ne, %10, %c0_i32_9 : i32
    scf.if %11 {
      %c0_10 = arith.constant 0 : index
      %c0_11 = arith.constant 0 : index
      %12 = vector.load %arg7[%c0_10, %c0_11] : memref<16x64xf32, #tpu.memory_space<vmem>>, vector<16x64xf32>
      %c0_12 = arith.constant 0 : index
      %c0_13 = arith.constant 0 : index
      %13 = vector.load %arg5[%c0_12, %c0_13] : memref<1x64xf32, #tpu.memory_space<vmem>>, vector<1x64xf32>
      %14 = vector.broadcast %13 : vector<1x64xf32> to vector<16x64xf32>
      %15 = arith.addf %12, %14 : vector<16x64xf32>
      %16 = arith.truncf %15 : vector<16x64xf32> to vector<16x64xbf16>
      %c0_14 = arith.constant 0 : index
      %c0_15 = arith.constant 0 : index
      %17 = vector.load %arg6[%c0_14, %c0_15] : memref<16x64xbf16, #tpu.memory_space<vmem>>, vector<16x64xbf16>
      tpu.vector_store %arg6[%c0_14, %c0_15], %16 {strides = array<i32>} : memref<16x64xbf16, #tpu.memory_space<vmem>>, vector<16x64xbf16>,
    } else {
    }
    return
  }
  func.func @transform_0(%arg0: i32, %arg1: i32, %arg2: i32) -> (i32, i32) {
    %c0_i32 = arith.constant 0 : i32
    return %arg0, %arg2 : i32, i32
  }
  func.func @transform_1(%arg0: i32, %arg1: i32, %arg2: i32) -> (i32, i32) {
    %c0_i32 = arith.constant 0 : i32
    return %arg2, %arg1 : i32, i32
  }
  func.func @transform_2(%arg0: i32, %arg1: i32, %arg2: i32) -> (i32, i32) {
    %c0_i32 = arith.constant 0 : i32
    %c0_i32_0 = arith.constant 0 : i32
    return %c0_i32, %arg1 : i32, i32
  }
  func.func @transform_3(%arg0: i32, %arg1: i32, %arg2: i32) -> (i32, i32) {
    %c0_i32 = arith.constant 0 : i32
    return %arg0, %arg1 : i32, i32
  }
}

module attributes {stable_mosaic.version = 11 : i64} {
  func.func @_layernorm_kernel(%arg0: i32, %arg1: memref<16x32xbf16, #tpu.memory_space<vmem>>, %arg2: memref<1x32xf32, #tpu.memory_space<vmem>>, %arg3: memref<1x32xf32, #tpu.memory_space<vmem>>, %arg4: memref<16x32xbf16, #tpu.memory_space<vmem>>) attributes {dimension_semantics = [#tpu.dimension_semantics<parallel>], iteration_bounds = array<i64: 1>, scalar_prefetch = 0 : i64, scratch_operands = 0 : i64, tpu.core_type = #tpu.core_type<tc>, window_params = [{transform_indices = @transform_0, window_bounds = array<i64: 16, 32>}, {pipeline_mode = #tpu.pipeline_mode<synchronous>, transform_indices = @transform_1, window_bounds = array<i64: 1, 32>}, {pipeline_mode = #tpu.pipeline_mode<synchronous>, transform_indices = @transform_2, window_bounds = array<i64: 1, 32>}, {transform_indices = @transform_3, window_bounds = array<i64: 16, 32>}]} {
    %c0 = arith.constant 0 : index
    %c0_0 = arith.constant 0 : index
    %0 = vector.load %arg1[%c0, %c0_0] : memref<16x32xbf16, #tpu.memory_space<vmem>>, vector<16x32xbf16>
    %1 = arith.extf %0 : vector<16x32xbf16> to vector<16x32xf32>
    %cst = arith.constant dense<0.000000e+00> : vector<16xf32>
    %2 = vector.multi_reduction <add>, %1, %cst [1] : vector<16x32xf32> to vector<16xf32>
    %3 = vector.shape_cast %2 : vector<16xf32> to vector<16x1xf32>
    %4 = arith.mulf %1, %1 : vector<16x32xf32>
    %cst_1 = arith.constant dense<0.000000e+00> : vector<16xf32>
    %5 = vector.multi_reduction <add>, %4, %cst_1 [1] : vector<16x32xf32> to vector<16xf32>
    %6 = vector.shape_cast %5 : vector<16xf32> to vector<16x1xf32>
    %cst_2 = arith.constant 3.125000e-02 : f32
    %7 = vector.broadcast %cst_2 : f32 to vector<16x1xf32>
    %8 = arith.mulf %3, %7 : vector<16x1xf32>
    %cst_3 = arith.constant 3.125000e-02 : f32
    %9 = vector.broadcast %cst_3 : f32 to vector<16x1xf32>
    %10 = arith.mulf %6, %9 : vector<16x1xf32>
    %11 = arith.mulf %8, %8 : vector<16x1xf32>
    %12 = arith.subf %10, %11 : vector<16x1xf32>
    %cst_4 = arith.constant 0.000000e+00 : f32
    %13 = vector.broadcast %cst_4 : f32 to vector<16x1xf32>
    %14 = arith.maximumf %12, %13 : vector<16x1xf32>
    %15 = vector.broadcast %8 : vector<16x1xf32> to vector<16x32xf32>
    %16 = arith.subf %1, %15 : vector<16x32xf32>
    %cst_5 = arith.constant 9.99999974E-6 : f32
    %17 = vector.broadcast %cst_5 : f32 to vector<16x1xf32>
    %18 = arith.addf %14, %17 : vector<16x1xf32>
    %19 = math.rsqrt %18 : vector<16x1xf32>
    %20 = vector.broadcast %19 : vector<16x1xf32> to vector<16x32xf32>
    %21 = arith.mulf %16, %20 : vector<16x32xf32>
    %c0_6 = arith.constant 0 : index
    %c0_7 = arith.constant 0 : index
    %22 = vector.load %arg2[%c0_6, %c0_7] : memref<1x32xf32, #tpu.memory_space<vmem>>, vector<1x32xf32>
    %23 = vector.broadcast %22 : vector<1x32xf32> to vector<16x32xf32>
    %24 = arith.mulf %21, %23 : vector<16x32xf32>
    %c0_8 = arith.constant 0 : index
    %c0_9 = arith.constant 0 : index
    %25 = vector.load %arg3[%c0_8, %c0_9] : memref<1x32xf32, #tpu.memory_space<vmem>>, vector<1x32xf32>
    %26 = vector.broadcast %25 : vector<1x32xf32> to vector<16x32xf32>
    %27 = arith.addf %24, %26 : vector<16x32xf32>
    %28 = arith.truncf %27 : vector<16x32xf32> to vector<16x32xbf16>
    %c0_10 = arith.constant 0 : index
    %c0_11 = arith.constant 0 : index
    %29 = vector.load %arg4[%c0_10, %c0_11] : memref<16x32xbf16, #tpu.memory_space<vmem>>, vector<16x32xbf16>
    tpu.vector_store %arg4[%c0_10, %c0_11], %28 {strides = array<i32>} : memref<16x32xbf16, #tpu.memory_space<vmem>>, vector<16x32xbf16>,
    return
  }
  func.func @transform_0(%arg0: i32) -> (i32, i32) {
    %c0_i32 = arith.constant 0 : i32
    %c0_i32_0 = arith.constant 0 : i32
    return %arg0, %c0_i32 : i32, i32
  }
  func.func @transform_1(%arg0: i32) -> (i32, i32) {
    %c0_i32 = arith.constant 0 : i32
    %c0_i32_0 = arith.constant 0 : i32
    %c0_i32_1 = arith.constant 0 : i32
    return %c0_i32, %c0_i32_0 : i32, i32
  }
  func.func @transform_2(%arg0: i32) -> (i32, i32) {
    %c0_i32 = arith.constant 0 : i32
    %c0_i32_0 = arith.constant 0 : i32
    %c0_i32_1 = arith.constant 0 : i32
    return %c0_i32, %c0_i32_0 : i32, i32
  }
  func.func @transform_3(%arg0: i32) -> (i32, i32) {
    %c0_i32 = arith.constant 0 : i32
    %c0_i32_0 = arith.constant 0 : i32
    return %arg0, %c0_i32 : i32, i32
  }
}

module attributes {stable_mosaic.version = 11 : i64} {
  func.func @_linear_kernel(%arg0: i32, %arg1: i32, %arg2: i32, %arg3: memref<16x32xbf16, #tpu.memory_space<vmem>>, %arg4: memref<32x128xbf16, #tpu.memory_space<vmem>>, %arg5: memref<1x128xf32, #tpu.memory_space<vmem>>, %arg6: memref<16x128xf32, #tpu.memory_space<vmem>>, %arg7: memref<16x128xf32, #tpu.memory_space<vmem>>) attributes {dimension_semantics = [#tpu.dimension_semantics<parallel>, #tpu.dimension_semantics<parallel>, #tpu.dimension_semantics<arbitrary>], iteration_bounds = array<i64: 1, 1, 1>, scalar_prefetch = 0 : i64, scratch_operands = 1 : i64, tpu.core_type = #tpu.core_type<tc>, window_params = [{transform_indices = @transform_0, window_bounds = array<i64: 16, 32>}, {transform_indices = @transform_1, window_bounds = array<i64: 32, 128>}, {transform_indices = @transform_2, window_bounds = array<i64: 1, 128>}, {transform_indices = @transform_3, window_bounds = array<i64: 16, 128>}]} {
    %c0_i32 = arith.constant 0 : i32
    %0 = arith.cmpi eq, %arg2, %c0_i32 : i32
    %1 = arith.extui %0 : i1 to i32
    %c0_i32_0 = arith.constant 0 : i32
    %2 = arith.cmpi ne, %1, %c0_i32_0 : i32
    scf.if %2 {
      %cst_10 = arith.constant 0.000000e+00 : f32
      %12 = vector.broadcast %cst_10 : f32 to vector<16x128xf32>
      %c0_11 = arith.constant 0 : index
      %c0_12 = arith.constant 0 : index
      %13 = vector.load %arg7[%c0_11, %c0_12] : memref<16x128xf32, #tpu.memory_space<vmem>>, vector<16x128xf32>
      tpu.vector_store %arg7[%c0_11, %c0_12], %12 {strides = array<i32>} : memref<16x128xf32, #tpu.memory_space<vmem>>, vector<16x128xf32>,
    } else {
    }
    %c0 = arith.constant 0 : index
    %c0_1 = arith.constant 0 : index
    %3 = vector.load %arg7[%c0, %c0_1] : memref<16x128xf32, #tpu.memory_space<vmem>>, vector<16x128xf32>
    %c0_2 = arith.constant 0 : index
    %c0_3 = arith.constant 0 : index
    %4 = vector.load %arg3[%c0_2, %c0_3] : memref<16x32xbf16, #tpu.memory_space<vmem>>, vector<16x32xbf16>
    %c0_4 = arith.constant 0 : index
    %c0_5 = arith.constant 0 : index
    %5 = vector.load %arg4[%c0_4, %c0_5] : memref<32x128xbf16, #tpu.memory_space<vmem>>, vector<32x128xbf16>
    %cst = arith.constant dense<0.000000e+00> : vector<16x128xf32>
    %6 = tpu.matmul %4, %5, %cst {dimension_numbers = #tpu.dot_dimension_numbers<[1], [0], [0], [1], [0, 0, 1, 1], [], []>} : vector<16x32xbf16>, vector<32x128xbf16>, vector<16x128xf32> -> vector<16x128xf32>
    %7 = arith.addf %3, %6 : vector<16x128xf32>
    %c0_6 = arith.constant 0 : index
    %c0_7 = arith.constant 0 : index
    %8 = vector.load %arg7[%c0_6, %c0_7] : memref<16x128xf32, #tpu.memory_space<vmem>>, vector<16x128xf32>
    tpu.vector_store %arg7[%c0_6, %c0_7], %7 {strides = array<i32>} : memref<16x128xf32, #tpu.memory_space<vmem>>, vector<16x128xf32>,
    %c0_i32_8 = arith.constant 0 : i32
    %9 = arith.cmpi eq, %arg2, %c0_i32_8 : i32
    %10 = arith.extui %9 : i1 to i32
    %c0_i32_9 = arith.constant 0 : i32
    %11 = arith.cmpi ne, %10, %c0_i32_9 : i32
    scf.if %11 {
      %c0_10 = arith.constant 0 : index
      %c0_11 = arith.constant 0 : index
      %12 = vector.load %arg7[%c0_10, %c0_11] : memref<16x128xf32, #tpu.memory_space<vmem>>, vector<16x128xf32>
      %c0_12 = arith.constant 0 : index
      %c0_13 = arith.constant 0 : index
      %13 = vector.load %arg5[%c0_12, %c0_13] : memref<1x128xf32, #tpu.memory_space<vmem>>, vector<1x128xf32>
      %14 = vector.broadcast %13 : vector<1x128xf32> to vector<16x128xf32>
      %15 = arith.addf %12, %14 : vector<16x128xf32>
      %c0_14 = arith.constant 0 : index
      %c0_15 = arith.constant 0 : index
      %16 = vector.load %arg6[%c0_14, %c0_15] : memref<16x128xf32, #tpu.memory_space<vmem>>, vector<16x128xf32>
      tpu.vector_store %arg6[%c0_14, %c0_15], %15 {strides = array<i32>} : memref<16x128xf32, #tpu.memory_space<vmem>>, vector<16x128xf32>,
    } else {
    }
    return
  }
  func.func @transform_0(%arg0: i32, %arg1: i32, %arg2: i32) -> (i32, i32) {
    %c0_i32 = arith.constant 0 : i32
    return %arg0, %arg2 : i32, i32
  }
  func.func @transform_1(%arg0: i32, %arg1: i32, %arg2: i32) -> (i32, i32) {
    %c0_i32 = arith.constant 0 : i32
    return %arg2, %arg1 : i32, i32
  }
  func.func @transform_2(%arg0: i32, %arg1: i32, %arg2: i32) -> (i32, i32) {
    %c0_i32 = arith.constant 0 : i32
    %c0_i32_0 = arith.constant 0 : i32
    return %c0_i32, %arg1 : i32, i32
  }
  func.func @transform_3(%arg0: i32, %arg1: i32, %arg2: i32) -> (i32, i32) {
    %c0_i32 = arith.constant 0 : i32
    return %arg0, %arg1 : i32, i32
  }
}

</mosaic_0001>

<bundles_post_ra>
// kernel: transformer_forward.50
= control target key start
LH: loop header
LB: loop body
LE: loop exit
PB: predicated region body
PF: predicated region fallthrough
CT: control target
= control target key end

     0   :  { %vm19_vm0 = vcmask 785408   ;;  %v151_v0 = vmov 0.0   ;;  %vm152_vm1 = vmmov 0   ;;  %vm47_vm2 = vcmask 261120   ;;  %s195_s1 = inlined_call_operand.vmem [shape: bf16[32,96], index: 1, kind: input, shape index: {}]   ;;  %s196_s0 = inlined_call_operand.vmem [shape: bf16[16,32], index: 0, kind: input, shape index: {}]   ;;  %s197_s2 = inlined_call_operand.vmem [shape: f32[1,96], index: 2, kind: input, shape index: {}]   ;;  %s198_s3 = inlined_call_operand.vmem [shape: bf16[16,96], index: 3, kind: output, shape index: {}]  }
   0x1   :  { %138 = vmatprep.subr.bf16.mxu0 %v151_v0  ;;  %v148_v1 = vld [vmem:[%s195_s1 + $0x8] sm:$0xff]   ;;  %142 = vmatprep.mubr.msk.bf16.mxu0 %vm152_vm1, %v151_v0  ;;  %20 = vst.msk [vmem:[#allocation2] sm:$0xff] %vm19_vm0, %v151_v0  ;;  %21 = vst.msk [vmem:[#allocation2 + $0x8] sm:$0xff] %vm19_vm0, %v151_v0  ;;  %v149_v2 = vld [vmem:[%s195_s1] sm:$0xff]   ;;  %vm119_vm3 = vcmask 781312  }
   0x2   :  { %139 = vmatpush3.bf16.msra.mxu0 %v148_v1  ;;  %v150_v3 = vld [vmem:[%s196_s0] sm:$0xff]  }
   0x3   :  { %140 = vmatprep.subr.bf16.mxu0 %v151_v0  ;;  %v130_v12 = vld [vmem:[%s197_s2] ss:$0 sm:$0xff] }
   0x6   :  { %141 = vmatpush3.bf16.msra.mxu0 %v149_v2 }
   0x8   :  { %v22_v4 = vld [vmem:[#allocation2] sm:$0xff]  ;;  %v23_v8 = vld [vmem:[#allocation2 + $0x8] sm:$0xff] }
   0x9   :  { %143 = vmatmul.mubr.msk.bf16.vlgmr.msra.gmra.mxu0 %vm47_vm2, %v150_v3 }
  0xc9   :  { %v85_v5 = vpop.f32.mrf.mxu0 }
  0xca   :  { %v92_v6 = vadd.f32 %v85_v5, %v22_v4 }
  0xcb   :  { %v144_v7 = vpop.f32.mrf.mxu0 }
  0xcc   :  { %95 = vst.msk [vmem:[#allocation2] sm:$0xff] %vm19_vm0, %v92_v6 }
  0xcd   :  { %v88_v9 = vpop.f32.mrf.mxu0 }
  0xce   :  { %v93_v10 = vadd.f32 %v88_v9, %v23_v8 }
  0xcf   :  { %v145_v11 = vpop.f32.mrf.mxu0 }
  0xd0   :  { %96 = vst.msk [vmem:[#allocation2 + $0x8] sm:$0xff] %vm19_vm0, %v93_v10 }
  0xd3   :  { %v100_v13 = vld [vmem:[#allocation2] sm:$0xff] }
  0xd4   :  { %v109_v14 = vadd.f32 %v130_v12, %v100_v13 }
  0xd6   :  { %v133_v15 = vpack.c.bf16 %v109_v14, %v109_v14 }
  0xd7   :  { %v101_v16 = vld [vmem:[#allocation2 + $0x8] sm:$0xff] }
  0xd8   :  { %120 = vst.msk [vmem:[%s198_s3] sm:$0xf] %vm119_vm3, %v133_v15  ;;  %v110_v17 = vadd.f32 %v130_v12, %v101_v16 }
  0xda   :  { %v134_v18 = vpack.c.bf16 %v110_v17, %v110_v17 }
  0xdc   :  { %121 = vst.msk [vmem:[%s198_s3 + $0x4] sm:$0xf] %vm119_vm3, %v134_v18 }

// kernel: transformer_forward.51
= control target key start
LH: loop header
LB: loop body
LE: loop exit
PB: predicated region body
PF: predicated region fallthrough
CT: control target
= control target key end

     0   :  { %s1138_s12 = smov 0   ;;  %s1140_s13 = smov 0   ;;  %s1321_s0 = inlined_call_operand.vmem [shape: bf16[8,8,8], index: 0, kind: input, shape index: {}]   ;;  %s1322_s1 = inlined_call_operand.vmem [shape: bf16[8,8,8], index: 1, kind: input, shape index: {}]   ;;  %s1323_s2 = inlined_call_operand.vmem [shape: bf16[8,8,8], index: 2, kind: input, shape index: {}]   ;;  %s1324_s3 = inlined_call_operand.vmem [shape: bf16[8,8,8], index: 3, kind: output, shape index: {}]  }
   0x1   :  { %s1142_s14 = smov 0  }
   0x2 LB: > { %s25_s15 = sadd.s32 1, %s1108_s13  ;;  %p953_p0 = scmp.ge.s32.totalorder %s1112_s14, 1  ;;  %s1112_s14 = sphi %s1142_s14, %s13_s14   ;;  %s1108_s13 = sphi %s1140_s13, %s1326_s13   ;;  %s1104_s12 = sphi %s1138_s12, %s1325_s12  }
   0x3   : > { %p27_p1 = scmp.ge.s32.totalorder %s25_s15, 2  ;;  %p182_p2 = scmp.lt.s32.totalorder %s1112_s14, 3 }
   0x5   : > { %s1328_s15 = smov (%p27_p1, %s25_s15), 0  ;;  %p183_p3 = pnand %p953_p0, %p182_p2 }
   0x6   : > { %s954_s16 = sshll.u32 (!%p183_p3), %s1104_s12, 2 }
   0x7   : > { %186 = sbr.rel (%p183_p3) target bundleno = 807 (0x327), region = 32  ;;  %p223_p4 = scmp.lt.s32.totalorder (!%p183_p3), %s954_s16, 7 }
   0xc   : > { %vm266_vm0 = vcmask 64512   ;;  %v1114_v0 = vmov 0.0   ;;  %vm1115_vm1 = vmmov 0   ;;  %s1330_s16 = smov (!%p223_p4, %s954_s16), 7  ;;  %vm257_vm2 = vcmask 7168  }
   0xd   : > { %988 = vmatprep.subr.bf16.mxu0 %v1114_v0  ;;  %994 = vmatprep.subr.bf16.mxu1 %v1114_v0  ;;  %267 = vst.msk [vmem:[#allocation4] sm:$0xff] %vm266_vm0, %v1114_v0  ;;  %268 = vst.msk [vmem:[#allocation4 + $0x8] sm:$0xff] %vm266_vm0, %v1114_v0  ;;  %s1170_s17 = sshll.u32 %s1330_s16, 2  ;;  %v1116_v13 = vmov -inf   ;;  %v468_v14 = vlaneseq  ;;  %v1117_v45 = vmov 0   ;;  %vm612_vm4 = vcmask 1043456  }
   0xe   : > { %269 = vst.msk [vmem:[#allocation4 + $0x10] sm:$0xff] %vm266_vm0, %v1114_v0  ;;  %270 = vst.msk [vmem:[#allocation4 + $0x18] sm:$0xff] %vm266_vm0, %v1114_v0  ;;  %990 = vmatprep.mubr.msk.bf16.mxu0 %vm1115_vm1, %v1114_v0  ;;  %996 = vmatprep.mubr.msk.bf16.mxu1 %vm1115_vm1, %v1114_v0  ;;  %s235_s20 = scalar_lea.vmem %s1322_s1, %s1170_s17  ;;  %s226_s23 = scalar_lea.vmem %s1321_s0, %s1170_s17  ;;  %vm849_vm5 = vcmask 60416  }
   0xf   : > { %v275_v1 = vld [vmem:[%s235_s20] sm:$0xf]  ;;  %v276_v2 = vld [vmem:[%s235_s20 + $0x4] sm:$0xf]  ;;  %v277_v5 = vld [vmem:[%s235_s20 + $0x8] sm:$0xf]  ;;  %1064 = vset.pattern.permute.xlu0 %v1117_v45  ;;  %1065 = vset.pattern.permute.xlu1 %v1117_v45  ;;  %s244_s26 = scalar_lea.vmem %s1323_s2, %s1170_s17  ;;  %s250_s29 = scalar_lea.vmem %s1324_s3, %s1170_s17 }
  0x10   : > { %v284_v3 = vsel %vm266_vm0, %v275_v1, 0  ;;  %v330_v4 = vsel %vm266_vm0, %v276_v2, 0  ;;  %v278_v6 = vld [vmem:[%s235_s20 + $0xc] sm:$0xf]  ;;  %v271_v7 = vld [vmem:[%s226_s23] sm:$0xf] }
  0x11   : > { %989 = vmatpush3.bf16.xpose.msra.mxu0 %v284_v3  ;;  %995 = vmatpush3.bf16.xpose.msra.mxu1 %v330_v4  ;;  %v272_v8 = vld [vmem:[%s226_s23 + $0x4] sm:$0xf]  ;;  %v376_v9 = vsel %vm266_vm0, %v277_v5, 0  ;;  %v422_v10 = vsel %vm266_vm0, %v278_v6, 0  ;;  %v273_v11 = vld [vmem:[%s226_s23 + $0x8] sm:$0xf] }
  0x12   : > { %1000 = vmatprep.subr.bf16.mxu0 %v1114_v0  ;;  %1006 = vmatprep.subr.bf16.mxu1 %v1114_v0  ;;  %v274_v12 = vld [vmem:[%s226_s23 + $0xc] sm:$0xf]  ;;  %258 = vst.msk [vmem:[#allocation2] sm:$0xff] %vm257_vm2, %v1116_v13  ;;  %259 = vst.msk [vmem:[#allocation2 + $0x8] sm:$0xff] %vm257_vm2, %v1116_v13  ;;  %v469_v15 = vshrl.u32 %v468_v14, 7  ;;  %v471_v16 = vand.u32 127, %v468_v14 }
  0x13   : > { %260 = vst.msk [vmem:[#allocation2 + $0x10] sm:$0xff] %vm257_vm2, %v1116_v13  ;;  %261 = vst.msk [vmem:[#allocation2 + $0x18] sm:$0xff] %vm257_vm2, %v1116_v13  ;;  %v605_v61 = vld [vmem:[%s244_s26] sm:$0xf]  ;;  %v606_v1 = vld [vmem:[%s244_s26 + $0x4] sm:$0xf] }
  0x14   : > { %262 = vst.msk [vmem:[#allocation3] sm:$0xff] %vm257_vm2, %v1114_v0  ;;  %263 = vst.msk [vmem:[#allocation3 + $0x8] sm:$0xff] %vm257_vm2, %v1114_v0  ;;  %vm475_vm3 = vcmp.le.s32.totalorder %v471_v16, %v469_v15  ;;  %v614_v63 = vsel %vm612_vm4, %v605_v61, 0  ;;  %v660_v2 = vsel %vm612_vm4, %v606_v1, 0  ;;  %v607_v3 = vld [vmem:[%s244_s26 + $0x8] sm:$0xf] }
  0x15   : > { %264 = vst.msk [vmem:[#allocation3 + $0x10] sm:$0xff] %vm257_vm2, %v1114_v0  ;;  %265 = vst.msk [vmem:[#allocation3 + $0x18] sm:$0xff] %vm257_vm2, %v1114_v0  ;;  %v706_v4 = vsel %vm612_vm4, %v607_v3, 0  ;;  %v608_v5 = vld [vmem:[%s244_s26 + $0xc] sm:$0xf] }
  0x16   : > { %v752_v6 = vsel %vm612_vm4, %v608_v5, 0 }
  0x18   : > { %991 = vmatmul.mubr.msk.bf16.vlgmr.msra.gmra.mxu0 %vm266_vm0, %v271_v7  ;;  %997 = vmatmul.mubr.msk.bf16.vlgmr.msra.gmra.mxu1 %vm266_vm0, %v272_v8 }
  0x19   : > { %1001 = vmatpush3.bf16.xpose.msra.mxu0 %v376_v9  ;;  %1007 = vmatpush3.bf16.xpose.msra.mxu1 %v422_v10  ;;  %v1229_v46 = vld [vmem:[#allocation2] sm:$0xff]  ;;  %v1234_v49 = vld [vmem:[#allocation2 + $0x8] sm:$0xff] }
  0x1a   : > { %1002 = vmatprep.mubr.msk.bf16.mxu0 %vm1115_vm1, %v1114_v0  ;;  %1008 = vmatprep.mubr.msk.bf16.mxu1 %vm1115_vm1, %v1114_v0  ;;  %v1244_v53 = vld [vmem:[#allocation2 + $0x10] sm:$0xff]  ;;  %v1254_v57 = vld [vmem:[#allocation2 + $0x18] sm:$0xff] }
  0x1b   : > { %1012 = vmatprep.subr.bf16.mxu0 %v1114_v0  ;;  %1018 = vmatprep.subr.bf16.mxu1 %v1114_v0 }
  0x1c   : > { %v546_v45 = vld [vmem:[#allocation3 + $0x10] sm:$0xff] }
  0x20   : > { %1003 = vmatmul.mubr.msk.bf16.vlgmr.msra.gmra.mxu0 %vm266_vm0, %v273_v11  ;;  %1009 = vmatmul.mubr.msk.bf16.vlgmr.msra.gmra.mxu1 %vm266_vm0, %v274_v12 }
  0x21   : > { %1014 = vmatprep.mubr.msk.bf16.mxu0 %vm1115_vm1, %v1114_v0  ;;  %1020 = vmatprep.mubr.msk.bf16.mxu1 %vm1115_vm1, %v1114_v0 }
  0x22   : > { %1013 = vmatpush3.bf16.msra.mxu0 %v614_v63  ;;  %1019 = vmatpush3.bf16.msra.mxu1 %v660_v2  ;;  %v573_v63 = vld [vmem:[#allocation4] sm:$0xff]  ;;  %v574_v2 = vld [vmem:[#allocation4 + $0x8] sm:$0xff] }
  0x23   : > { %1024 = vmatprep.subr.bf16.mxu0 %v1114_v0  ;;  %1030 = vmatprep.subr.bf16.mxu1 %v1114_v0 }
  0xd8   : > { %v320_v17 = vpop.f32.mrf.mxu0  ;;  %v366_v18 = vpop.f32.mrf.mxu1 }
  0xd9   : > { %v464_v19 = vmul.f32 0.35355338, %v320_v17  ;;  %v465_v20 = vmul.f32 0.35355338, %v366_v18 }
  0xda   : > { %v992_v21 = vpop.f32.mrf.mxu0  ;;  %v998_v22 = vpop.f32.mrf.mxu1 }
  0xdb   : > { %v1213_v23 = vsel %vm475_vm3, %v464_v19, -1e+30  ;;  %v1216_v24 = vsel %vm475_vm3, %v465_v20, -1e+30 }
  0xdc   : > { %v323_v25 = vpop.f32.mrf.mxu0  ;;  %v369_v26 = vpop.f32.mrf.mxu1  ;;  %v484_v27 = vsel %vm266_vm0, %v1213_v23, -inf  ;;  %v487_v30 = vsel %vm266_vm0, %v1216_v24, -inf }
  0xdd   : > { %485 = vmax.xlane.f32.xlu0 %v484_v27 }
  0xde   : > { %v993_v28 = vpop.f32.mrf.mxu0  ;;  %v999_v29 = vpop.f32.mrf.mxu1 }
  0xe0   : > { %v412_v31 = vpop.f32.mrf.mxu0  ;;  %v458_v32 = vpop.f32.mrf.mxu1 }
  0xe1   : > { %v466_v33 = vmul.f32 0.35355338, %v412_v31  ;;  %v467_v34 = vmul.f32 0.35355338, %v458_v32  ;;  %488 = vmax.xlane.f32.xlu0 %v487_v30 }
  0xe2   : > { %v1004_v35 = vpop.f32.mrf.mxu0  ;;  %v1010_v36 = vpop.f32.mrf.mxu1 }
  0xe3   : > { %v478_v37 = vsel %vm475_vm3, %v466_v33, -1e+30  ;;  %v1224_v38 = vsel %vm475_vm3, %v467_v34, -1e+30 }
  0xe4   : > { %v415_v39 = vpop.f32.mrf.mxu0  ;;  %v461_v40 = vpop.f32.mrf.mxu1  ;;  %v490_v41 = vsel %vm266_vm0, %v478_v37, -inf  ;;  %v493_v44 = vsel %vm266_vm0, %v1224_v38, -inf }
  0xe5   : > { %491 = vmax.xlane.f32.xlu1 %v490_v41  ;;  %v545_v41 = vld [vmem:[#allocation3 + $0x8] sm:$0xff] }
  0xe6   : > { %v1005_v42 = vpop.f32.mrf.mxu0  ;;  %v1011_v43 = vpop.f32.mrf.mxu1 }
  0xe9   : > { %494 = vmax.xlane.f32.xlu1 %v493_v44 }
 0x166   : > { %v486_v47 = vpop.xlane.xlu0 %485 }
 0x167   : > { %v1232_v48 = vmax.f32 %v1229_v46, %v486_v47 }
 0x169   : > { %v500_v50 = vsub.f32 %v1229_v46, %v1232_v48  ;;  %802 = vst.msk [vmem:[#allocation2] sm:$0xff] %vm257_vm2, %v1232_v48  ;;  %514 = vperm.xlu0 %1064, %v1232_v48  }
 0x16a   : > { %v489_v51 = vpop.xlane.xlu0 %488 }
 0x16b   : > { %v1242_v52 = vmax.f32 %v1234_v49, %v489_v51  ;;  %v504_v30 = vmul.f32 1.442695, %v500_v50 }
 0x16d   : > { %v501_v54 = vsub.f32 %v1234_v49, %v1242_v52  ;;  %803 = vst.msk [vmem:[#allocation2 + $0x8] sm:$0xff] %vm257_vm2, %v1242_v52  ;;  %519 = vperm.xlu1 %1065, %v1242_v52   ;;  %v547_v49 = vld [vmem:[#allocation3 + $0x18] sm:$0xff] }
 0x16e   : > { %v492_v55 = vpop.xlane.xlu1 %491 }
 0x16f   : > { %v1252_v56 = vmax.f32 %v1244_v53, %v492_v55  ;;  %v506_v28 = vmul.f32 1.442695, %v501_v54 }
 0x171   : > { %v502_v58 = vsub.f32 %v1244_v53, %v1252_v56  ;;  %804 = vst.msk [vmem:[#allocation2 + $0x10] sm:$0xff] %vm257_vm2, %v1252_v56  ;;  %524 = vperm.xlu1 %1065, %v1252_v56  }
 0x172   : > { %v495_v59 = vpop.xlane.xlu1 %494 }
 0x173   : > { %v1262_v60 = vmax.f32 %v1254_v57, %v495_v59 }
 0x175   : > { %v503_v62 = vsub.f32 %v1254_v57, %v1262_v60  ;;  %805 = vst.msk [vmem:[#allocation2 + $0x18] sm:$0xff] %vm257_vm2, %v1262_v60  ;;  %529 = vperm.xlu1 %1065, %v1262_v60  }
 0x177   : > { %v510_v33 = vmul.f32 1.442695, %v503_v62 }
 0x1e4   : > { %v515_v7 = vpop.permute.xlu0 %514 }
 0x1e5   : > { %v532_v8 = vsub.f32 %v1213_v23, %v515_v7 }
 0x1e7   : > { %v536_v9 = vmul.f32 1.442695, %v532_v8 }
 0x1e8   : > { %v520_v10 = vpop.permute.xlu1 %519 }
 0x1e9   : > { %1066 = vpow2.f32 %v536_v9  ;;  %v533_v11 = vsub.f32 %v1216_v24, %v520_v10  ;;  %v575_v9 = vld [vmem:[#allocation4 + $0x10] sm:$0xff] }
 0x1eb   : > { %v538_v12 = vmul.f32 1.442695, %v533_v11 }
 0x1ec   : > { %v525_v13 = vpop.permute.xlu1 %524 }
 0x1ed   : > { %1068 = vpow2.f32 %v538_v12  ;;  %v534_v14 = vsub.f32 %v478_v37, %v525_v13 }
 0x1ef   : > { %v540_v15 = vmul.f32 1.442695, %v534_v14 }
 0x1f0   : > { %v530_v16 = vpop.permute.xlu1 %529 }
 0x1f1   : > { %1070 = vpow2.f32 %v540_v15  ;;  %v535_v17 = vsub.f32 %v1224_v38, %v530_v16  ;;  %v544_v38 = vld [vmem:[#allocation3] sm:$0xff] }
 0x1f3   : > { %v542_v18 = vmul.f32 1.442695, %v535_v17  ;;  %v576_v17 = vld [vmem:[#allocation4 + $0x18] sm:$0xff] }
 0x1f5   : > { %1072 = vpow2.f32 %v542_v18 }
 0x1f6   : > { %v1067_v19 = vpop.eup %1066  ;;  %1074 = vpow2.f32 %v506_v28 }
 0x1f7   : > { %v552_v20 = vsel %vm266_vm0, %v1067_v19, 0.0  ;;  %v601_v21 = vpack.c.bf16 %v1067_v19, %v1067_v19  ;;  %1076 = vpow2.f32 %v504_v30 }
 0x1f8   : > { %553 = vadd.xlane.f32.xlu1 %v552_v20 }
 0x1f9   : > { %1015 = vmatmul.mubr.msk.bf16.vlgmr.msra.gmra.mxu0 %vm266_vm0, %v601_v21 }
 0x1fa   : > { %v1069_v22 = vpop.eup %1068  ;;  %1025 = vmatpush3.bf16.msra.mxu0 %v706_v4  ;;  %1026 = vmatprep.mubr.msk.bf16.mxu0 %vm1115_vm1, %v1114_v0 }
 0x1fb   : > { %v555_v23 = vsel %vm266_vm0, %v1069_v22, 0.0  ;;  %v602_v24 = vpack.c.bf16 %v1069_v22, %v1069_v22 }
 0x1fc   : > { %556 = vadd.xlane.f32.xlu0 %v555_v23 }
 0x1fd   : > { %1021 = vmatmul.mubr.msk.bf16.vlgmr.msra.gmra.mxu1 %vm266_vm0, %v602_v24 }
 0x1fe   : > { %v1071_v25 = vpop.eup %1070  ;;  %1031 = vmatpush3.bf16.msra.mxu1 %v752_v6  ;;  %1032 = vmatprep.mubr.msk.bf16.mxu1 %vm1115_vm1, %v1114_v0  ;;  %v508_v0 = vmul.f32 1.442695, %v502_v58 }
 0x1ff   : > { %v558_v26 = vsel %vm266_vm0, %v1071_v25, 0.0  ;;  %v603_v27 = vpack.c.bf16 %v1071_v25, %v1071_v25 }
 0x200   : > { %559 = vadd.xlane.f32.xlu1 %v558_v26  ;;  %1078 = vpow2.f32 %v508_v0 }
 0x201   : > { %1027 = vmatmul.mubr.msk.bf16.vlgmr.msra.gmra.mxu0 %vm266_vm0, %v603_v27  ;;  %1080 = vpow2.f32 %v510_v33 }
 0x202   : > { %v1073_v29 = vpop.eup %1072 }
 0x203   : > { %v561_v31 = vsel %vm266_vm0, %v1073_v29, 0.0  ;;  %v604_v32 = vpack.c.bf16 %v1073_v29, %v1073_v29  ;;  %v1075_v34 = vpop.eup %1074 }
 0x204   : > { %562 = vadd.xlane.f32.xlu1 %v561_v31  ;;  %v1077_v35 = vpop.eup %1076  ;;  %v549_v43 = vmul.f32 %v1075_v34, %v545_v41 }
 0x205   : > { %1033 = vmatmul.mubr.msk.bf16.vlgmr.msra.gmra.mxu1 %vm266_vm0, %v604_v32  ;;  %v548_v39 = vmul.f32 %v1077_v35, %v544_v38 }
 0x20d   : > { %v1079_v36 = vpop.eup %1078 }
 0x20e   : > { %v1081_v37 = vpop.eup %1080  ;;  %v550_v47 = vmul.f32 %v1079_v36, %v546_v45 }
 0x20f   : > { %v551_v52 = vmul.f32 %v1081_v37, %v547_v49 }
 0x212   : > { %584 = vperm.xlu0 %1064, %v1075_v34  }
 0x215   : > { %579 = vperm.xlu1 %1065, %v1077_v35  }
 0x219   : > { %589 = vperm.xlu1 %1065, %v1079_v36  }
 0x21d   : > { %594 = vperm.xlu1 %1065, %v1081_v37  }
 0x281   : > { %v554_v40 = vpop.xlane.xlu1 %553 }
 0x282   : > { %v564_v42 = vadd.f32 %v554_v40, %v548_v39 }
 0x284   : > { %569 = vst.msk [vmem:[#allocation3] sm:$0xff] %vm257_vm2, %v564_v42 }
 0x285   : > { %v557_v44 = vpop.xlane.xlu0 %556 }
 0x286   : > { %v565_v46 = vadd.f32 %v557_v44, %v549_v43 }
 0x288   : > { %570 = vst.msk [vmem:[#allocation3 + $0x8] sm:$0xff] %vm257_vm2, %v565_v46 }
 0x289   : > { %v560_v48 = vpop.xlane.xlu1 %559 }
 0x28a   : > { %v566_v50 = vadd.f32 %v560_v48, %v550_v47 }
 0x28b   : > { %v813_v51 = vld [vmem:[#allocation3] sm:$0xff] }
 0x28c   : > { %571 = vst.msk [vmem:[#allocation3 + $0x10] sm:$0xff] %vm257_vm2, %v566_v50  ;;  %1082 = vrcp.f32 %v813_v51 }
 0x28d   : > { %v563_v53 = vpop.xlane.xlu1 %562  ;;  %v585_v3 = vpop.permute.xlu0 %584 }
 0x28e   : > { %v567_v54 = vadd.f32 %v563_v53, %v551_v52  ;;  %v598_v8 = vmul.f32 %v585_v3, %v574_v2 }
 0x28f   : > { %v814_v55 = vld [vmem:[#allocation3 + $0x8] sm:$0xff] }
 0x290   : > { %572 = vst.msk [vmem:[#allocation3 + $0x18] sm:$0xff] %vm257_vm2, %v567_v54  ;;  %1084 = vrcp.f32 %v814_v55 }
 0x291   : > { %v580_v62 = vpop.permute.xlu1 %579 }
 0x292   : > { %v597_v1 = vmul.f32 %v580_v62, %v573_v63 }
 0x293   : > { %v815_v56 = vld [vmem:[#allocation3 + $0x10] sm:$0xff] }
 0x294   : > { %1086 = vrcp.f32 %v815_v56 }
 0x295   : > { %v590_v5 = vpop.permute.xlu1 %589 }
 0x296   : > { %v599_v15 = vmul.f32 %v590_v5, %v575_v9 }
 0x297   : > { %v816_v57 = vld [vmem:[#allocation3 + $0x18] sm:$0xff] }
 0x298   : > { %1088 = vrcp.f32 %v816_v57 }
 0x299   : > { %v1083_v58 = vpop.eup %1082  ;;  %v595_v16 = vpop.permute.xlu1 %594 }
 0x29a   : > { %823 = vperm.xlu1 %1065, %v1083_v58   ;;  %v600_v23 = vmul.f32 %v595_v16, %v576_v17 }
 0x29d   : > { %v1085_v59 = vpop.eup %1084 }
 0x29e   : > { %828 = vperm.xlu0 %1064, %v1085_v59  }
 0x2a1   : > { %v1087_v60 = vpop.eup %1086 }
 0x2a2   : > { %833 = vperm.xlu1 %1065, %v1087_v60  }
 0x2a5   : > { %v1089_v61 = vpop.eup %1088 }
 0x2a6   : > { %838 = vperm.xlu0 %1064, %v1089_v61  }
 0x2b9   : > { %v650_v4 = vpop.f32.mrf.mxu0 }
 0x2ba   : > { %v794_v6 = vadd.f32 %v650_v4, %v597_v1 }
 0x2bb   : > { %v1016_v7 = vpop.f32.mrf.mxu0 }
 0x2bc   : > { %798 = vst.msk [vmem:[#allocation4] sm:$0xff] %vm266_vm0, %v794_v6 }
 0x2bd   : > { %v653_v10 = vpop.f32.mrf.mxu0  ;;  %v696_v11 = vpop.f32.mrf.mxu1 }
 0x2be   : > { %v795_v12 = vadd.f32 %v696_v11, %v598_v8 }
 0x2bf   : > { %v1017_v13 = vpop.f32.mrf.mxu0  ;;  %v1022_v14 = vpop.f32.mrf.mxu1 }
 0x2c0   : > { %799 = vst.msk [vmem:[#allocation4 + $0x8] sm:$0xff] %vm266_vm0, %v795_v12 }
 0x2c1   : > { %v699_v18 = vpop.f32.mrf.mxu1  ;;  %v742_v19 = vpop.f32.mrf.mxu0 }
 0x2c2   : > { %v796_v20 = vadd.f32 %v742_v19, %v599_v15 }
 0x2c3   : > { %v1023_v21 = vpop.f32.mrf.mxu1  ;;  %v1028_v22 = vpop.f32.mrf.mxu0  ;;  %v809_v32 = vld [vmem:[#allocation4] sm:$0xff] }
 0x2c4   : > { %800 = vst.msk [vmem:[#allocation4 + $0x10] sm:$0xff] %vm266_vm0, %v796_v20 }
 0x2c5   : > { %v745_v24 = vpop.f32.mrf.mxu0  ;;  %v788_v25 = vpop.f32.mrf.mxu1 }
 0x2c6   : > { %v797_v26 = vadd.f32 %v788_v25, %v600_v23 }
 0x2c7   : > { %v1029_v27 = vpop.f32.mrf.mxu0  ;;  %v1034_v28 = vpop.f32.mrf.mxu1  ;;  %v810_v34 = vld [vmem:[#allocation4 + $0x8] sm:$0xff] }
 0x2c8   : > { %801 = vst.msk [vmem:[#allocation4 + $0x18] sm:$0xff] %vm266_vm0, %v797_v26 }
 0x2c9   : > { %v791_v29 = vpop.f32.mrf.mxu1 }
 0x2cb   : > { %v1035_v30 = vpop.f32.mrf.mxu1  ;;  %v811_v39 = vld [vmem:[#allocation4 + $0x10] sm:$0xff] }
 0x2cf   : > { %v812_v43 = vld [vmem:[#allocation4 + $0x18] sm:$0xff] }
 0x315   : > { %v824_v31 = vpop.permute.xlu1 %823 }
 0x316   : > { %v841_v0 = vmul.f32 %v824_v31, %v809_v32 }
 0x318   : > { %v845_v33 = vpack.c.bf16 %v841_v0, %v841_v0 }
 0x319   : > { %v829_v35 = vpop.permute.xlu0 %828 }
 0x31a   : > { %850 = vst.msk [vmem:[%s250_s29] sm:$0xf] %vm849_vm5, %v845_v33  ;;  %v842_v36 = vmul.f32 %v829_v35, %v810_v34 }
 0x31c   : > { %v846_v37 = vpack.c.bf16 %v842_v36, %v842_v36 }
 0x31d   : > { %v834_v38 = vpop.permute.xlu1 %833 }
 0x31e   : > { %851 = vst.msk [vmem:[%s250_s29 + $0x4] sm:$0xf] %vm849_vm5, %v846_v37  ;;  %v843_v40 = vmul.f32 %v834_v38, %v811_v39 }
 0x320   : > { %v847_v41 = vpack.c.bf16 %v843_v40, %v843_v40 }
 0x321   : > { %v839_v42 = vpop.permute.xlu0 %838 }
 0x322   : > { %852 = vst.msk [vmem:[%s250_s29 + $0x8] sm:$0xf] %vm849_vm5, %v847_v41  ;;  %v844_v44 = vmul.f32 %v839_v42, %v812_v43 }
 0x324   : > { %v848_v45 = vpack.c.bf16 %v844_v44, %v844_v44 }
 0x326   : > { %853 = vst.msk [vmem:[%s250_s29 + $0xc] sm:$0xf] %vm849_vm5, %v848_v45 }
 0x327 PF: > { %s13_s14 = sadd.s32 1, %s1112_s14   ;;  %s1325_s12 = smov %s1108_s13 }
 0x328   : > { %p10_p5 = scmp.ge.s32.totalorder %s13_s14, 4   ;;  %s1326_s13 = smov %s1328_s15 }
 0x32a   :  { %12 = sbr.rel (!%p10_p5) target bundleno = 2 (0x2), region = 76 }

// kernel: transformer_forward.53
= control target key start
LH: loop header
LB: loop body
LE: loop exit
PB: predicated region body
PF: predicated region fallthrough
CT: control target
= control target key end

     0   :  { %vm27_vm0 = vcmask 261120   ;;  %vm86_vm1 = vcmask 257024   ;;  %s154_s0 = inlined_call_operand.vmem [shape: bf16[16,32], index: 0, kind: input, shape index: {}]   ;;  %s155_s1 = inlined_call_operand.vmem [shape: bf16[16,32], index: 1, kind: input, shape index: {}]   ;;  %s156_s2 = inlined_call_operand.vmem [shape: f32[1,32], index: 2, kind: input, shape index: {}]   ;;  %s157_s3 = inlined_call_operand.vmem [shape: f32[1,32], index: 3, kind: input, shape index: {}]   ;;  %s158_s4 = inlined_call_operand.vmem [shape: bf16[16,32], index: 4, kind: output, shape index: {}]  }
   0x1   :  { %v100_v0 = vld [vmem:[%s154_s0] sm:$0xff]  }
   0x2   :  { %v104_v1 = vld [vmem:[%s155_s1] sm:$0xff]   ;;  %v101_v2 = vunpack.c.l.bf16 %v100_v0  ;;  %v102_v4 = vunpack.c.h.bf16 %v100_v0 }
   0x3   :  { %v105_v3 = vunpack.c.l.bf16 %v104_v1  ;;  %v106_v5 = vunpack.c.h.bf16 %v104_v1  ;;  %v93_v32 = vld [vmem:[%s156_s2] ss:$0 sm:$0xff] }
   0x4   :  { %v94_v34 = vld [vmem:[%s157_s3] ss:$0 sm:$0xff] }
   0x5   :  { %v25_v6 = vadd.f32 %v105_v3, %v101_v2  ;;  %v26_v7 = vadd.f32 %v106_v5, %v102_v4 }
   0x7   :  { %v28_v8 = vsel %vm27_vm0, %v25_v6, 0.0  ;;  %v34_v9 = vmul.f32 %v25_v6, %v25_v6  ;;  %v35_v10 = vmul.f32 %v26_v7, %v26_v7  ;;  %v31_v12 = vsel %vm27_vm0, %v26_v7, 0.0 }
   0x8   :  { %29 = vadd.xlane.f32.xlu0 %v28_v8 }
   0x9   :  { %v36_v11 = vsel %vm27_vm0, %v34_v9, 0.0  ;;  %v39_v13 = vsel %vm27_vm0, %v35_v10, 0.0 }
   0xa   :  { %37 = vadd.xlane.f32.xlu1 %v36_v11 }
   0xc   :  { %32 = vadd.xlane.f32.xlu0 %v31_v12 }
   0xe   :  { %40 = vadd.xlane.f32.xlu1 %v39_v13 }
  0x91   :  { %v30_v14 = vpop.xlane.xlu0 %29 }
  0x92   :  { %v42_v15 = vmul.f32 0.03125, %v30_v14 }
  0x93   :  { %v38_v16 = vpop.xlane.xlu1 %37 }
  0x94   :  { %v46_v17 = vmul.f32 %v42_v15, %v42_v15  ;;  %v44_v18 = vmul.f32 0.03125, %v38_v16  ;;  %v52_v30 = vsub.f32 %v25_v6, %v42_v15 }
  0x95   :  { %v33_v19 = vpop.xlane.xlu0 %32 }
  0x96   :  { %v48_v20 = vsub.f32 %v44_v18, %v46_v17  ;;  %v43_v21 = vmul.f32 0.03125, %v33_v19 }
  0x97   :  { %v41_v22 = vpop.xlane.xlu1 %40 }
  0x98   :  { %v50_v23 = vmax.f32 %v48_v20, 0.0  ;;  %v47_v24 = vmul.f32 %v43_v21, %v43_v21  ;;  %v45_v25 = vmul.f32 0.03125, %v41_v22  ;;  %v53_v36 = vsub.f32 %v26_v7, %v43_v21 }
  0x9a   :  { %v54_v26 = vadd.f32 1e-05, %v50_v23  ;;  %v49_v27 = vsub.f32 %v45_v25, %v47_v24 }
  0x9c   :  { %107 = vrsqrt.f32 %v54_v26  ;;  %v51_v28 = vmax.f32 %v49_v27, 0.0 }
  0x9e   :  { %v55_v29 = vadd.f32 1e-05, %v51_v28 }
  0xa0   :  { %109 = vrsqrt.f32 %v55_v29 }
  0xa9   :  { %v108_v31 = vpop.eup %107 }
  0xaa   :  { %v58_v33 = vmul.f32 %v108_v31, %v52_v30 }
  0xac   :  { %v67_v35 = vmul.f32 %v93_v32, %v58_v33 }
  0xad   :  { %v110_v37 = vpop.eup %109 }
  0xae   :  { %v76_v38 = vadd.f32 %v94_v34, %v67_v35  ;;  %v59_v39 = vmul.f32 %v110_v37, %v53_v36 }
  0xb0   :  { %v97_v40 = vpack.c.bf16 %v76_v38, %v76_v38  ;;  %v68_v41 = vmul.f32 %v93_v32, %v59_v39 }
  0xb2   :  { %87 = vst.msk [vmem:[%s158_s4] sm:$0xf] %vm86_vm1, %v97_v40  ;;  %v77_v42 = vadd.f32 %v94_v34, %v68_v41 }
  0xb4   :  { %v98_v43 = vpack.c.bf16 %v77_v42, %v77_v42 }
  0xb6   :  { %88 = vst.msk [vmem:[%s158_s4 + $0x4] sm:$0xf] %vm86_vm1, %v98_v43 }

// kernel: transformer_forward.52
= control target key start
LH: loop header
LB: loop body
LE: loop exit
PB: predicated region body
PF: predicated region fallthrough
CT: control target
= control target key end

     0   :  { %vm19_vm0 = vcmask 261120   ;;  %v150_v0 = vmov 0.0   ;;  %vm151_vm1 = vmmov 0   ;;  %vm118_vm2 = vcmask 257024   ;;  %s195_s1 = inlined_call_operand.vmem [shape: bf16[32,32], index: 1, kind: input, shape index: {}]   ;;  %s196_s0 = inlined_call_operand.vmem [shape: bf16[16,32], index: 0, kind: input, shape index: {}]   ;;  %s197_s2 = inlined_call_operand.vmem [shape: f32[1,32], index: 2, kind: input, shape index: {}]   ;;  %s198_s3 = inlined_call_operand.vmem [shape: bf16[16,32], index: 3, kind: output, shape index: {}]  }
   0x1   :  { %137 = vmatprep.subr.bf16.mxu0 %v150_v0  ;;  %v147_v1 = vld [vmem:[%s195_s1 + $0x8] sm:$0xff]   ;;  %141 = vmatprep.mubr.msk.bf16.mxu0 %vm151_vm1, %v150_v0  ;;  %20 = vst.msk [vmem:[#allocation2] sm:$0xff] %vm19_vm0, %v150_v0  ;;  %21 = vst.msk [vmem:[#allocation2 + $0x8] sm:$0xff] %vm19_vm0, %v150_v0  ;;  %v148_v2 = vld [vmem:[%s195_s1] sm:$0xff]  }
   0x2   :  { %138 = vmatpush3.bf16.msra.mxu0 %v147_v1  ;;  %v149_v3 = vld [vmem:[%s196_s0] sm:$0xff]  }
   0x3   :  { %139 = vmatprep.subr.bf16.mxu0 %v150_v0  ;;  %v129_v12 = vld [vmem:[%s197_s2] ss:$0 sm:$0xff] }
   0x6   :  { %140 = vmatpush3.bf16.msra.mxu0 %v148_v2 }
   0x8   :  { %v22_v4 = vld [vmem:[#allocation2] sm:$0xff]  ;;  %v23_v8 = vld [vmem:[#allocation2 + $0x8] sm:$0xff] }
   0x9   :  { %142 = vmatmul.mubr.msk.bf16.vlgmr.msra.gmra.mxu0 %vm19_vm0, %v149_v3 }
  0xc9   :  { %v85_v5 = vpop.f32.mrf.mxu0 }
  0xca   :  { %v92_v6 = vadd.f32 %v85_v5, %v22_v4 }
  0xcb   :  { %v143_v7 = vpop.f32.mrf.mxu0 }
  0xcc   :  { %94 = vst.msk [vmem:[#allocation2] sm:$0xff] %vm19_vm0, %v92_v6 }
  0xcd   :  { %v88_v9 = vpop.f32.mrf.mxu0 }
  0xce   :  { %v93_v10 = vadd.f32 %v88_v9, %v23_v8 }
  0xcf   :  { %v144_v11 = vpop.f32.mrf.mxu0 }
  0xd0   :  { %95 = vst.msk [vmem:[#allocation2 + $0x8] sm:$0xff] %vm19_vm0, %v93_v10 }
  0xd3   :  { %v99_v13 = vld [vmem:[#allocation2] sm:$0xff] }
  0xd4   :  { %v108_v14 = vadd.f32 %v129_v12, %v99_v13 }
  0xd6   :  { %v132_v15 = vpack.c.bf16 %v108_v14, %v108_v14 }
  0xd7   :  { %v100_v16 = vld [vmem:[#allocation2 + $0x8] sm:$0xff] }
  0xd8   :  { %119 = vst.msk [vmem:[%s198_s3] sm:$0xf] %vm118_vm2, %v132_v15  ;;  %v109_v17 = vadd.f32 %v129_v12, %v100_v16 }
  0xda   :  { %v133_v18 = vpack.c.bf16 %v109_v17, %v109_v17 }
  0xdc   :  { %120 = vst.msk [vmem:[%s198_s3 + $0x4] sm:$0xf] %vm118_vm2, %v133_v18 }

// kernel: transformer_forward.41
= control target key start
LH: loop header
LB: loop body
LE: loop exit
PB: predicated region body
PF: predicated region fallthrough
CT: control target
= control target key end

     0   :  { %vm25_vm0 = vcmask 261120   ;;  %v270_v0 = vmov 0.0   ;;  %vm271_vm1 = vmmov 0   ;;  %vm140_vm2 = vcmask 523264   ;;  %s340_s1 = inlined_call_operand.vmem [shape: bf16[32,64], index: 1, kind: input, shape index: {}]   ;;  %s341_s3 = inlined_call_operand.vmem [shape: bf16[64,32], index: 3, kind: input, shape index: {}]   ;;  %s342_s0 = inlined_call_operand.vmem [shape: bf16[16,32], index: 0, kind: input, shape index: {}]   ;;  %s343_s2 = inlined_call_operand.vmem [shape: f32[1,64], index: 2, kind: input, shape index: {}]   ;;  %s344_s4 = inlined_call_operand.vmem [shape: f32[1,32], index: 4, kind: input, shape index: {}]   ;;  %s345_s5 = inlined_call_operand.vmem [shape: bf16[16,32], index: 5, kind: output, shape index: {}]  }
   0x1   :  { %241 = vmatprep.subr.bf16.mxu0 %v270_v0  ;;  %v263_v1 = vld [vmem:[%s340_s1 + $0x8] sm:$0xff]   ;;  %245 = vmatprep.mubr.msk.bf16.mxu0 %vm271_vm1, %v270_v0  ;;  %26 = vst.msk [vmem:[#allocation2] sm:$0xff] %vm25_vm0, %v270_v0  ;;  %27 = vst.msk [vmem:[#allocation2 + $0x8] sm:$0xff] %vm25_vm0, %v270_v0  ;;  %v264_v2 = vld [vmem:[%s340_s1] sm:$0xff]   ;;  %vm211_vm3 = vcmask 257024  }
   0x2   :  { %249 = vmatprep.subr.bf16.mxu1 %v270_v0  ;;  %257 = vmatprep.mubr.msk.bf16.mxu1 %vm271_vm1, %v270_v0  ;;  %v266_v3 = vld [vmem:[%s341_s3 + $0x18] sm:$0xff]   ;;  %v265_v4 = vld [vmem:[%s342_s0] sm:$0xff]   ;;  %v267_v5 = vld [vmem:[%s341_s3 + $0x10] sm:$0xff]  }
   0x3   :  { %242 = vmatpush3.bf16.msra.mxu0 %v263_v1  ;;  %250 = vmatpush3.bf16.msra.mxu1 %v266_v3  ;;  %v268_v6 = vld [vmem:[%s341_s3 + $0x8] sm:$0xff]   ;;  %v269_v7 = vld [vmem:[%s341_s3] sm:$0xff]  }
   0x4   :  { %243 = vmatprep.subr.bf16.mxu0 %v270_v0  ;;  %251 = vmatprep.subr.bf16.mxu1 %v270_v0  ;;  %v218_v8 = vld [vmem:[%s343_s2] ss:$0 sm:$0xff] }
   0x5   :  { %v228_v26 = vld [vmem:[%s344_s4] ss:$0 sm:$0xff] }
   0x7   :  { %244 = vmatpush3.bf16.msra.mxu0 %v264_v2  ;;  %252 = vmatpush3.bf16.msra.mxu1 %v267_v5 }
   0x8   :  { %253 = vmatprep.subr.bf16.mxu1 %v270_v0  ;;  %v105_v18 = vld [vmem:[#allocation2] sm:$0xff]  ;;  %v106_v22 = vld [vmem:[#allocation2 + $0x8] sm:$0xff] }
   0xa   :  { %246 = vmatmul.mubr.msk.bf16.vlgmr.msra.gmra.mxu0 %vm25_vm0, %v265_v4 }
   0xb   :  { %254 = vmatpush3.bf16.msra.mxu1 %v268_v6 }
   0xc   :  { %255 = vmatprep.subr.bf16.mxu1 %v270_v0 }
   0xf   :  { %256 = vmatpush3.bf16.msra.mxu1 %v269_v7 }
  0xca   :  { %v96_v9 = vpop.f32.mrf.mxu0 }
  0xcb   :  { %v97_v11 = vadd.f32 %v218_v8, %v96_v9 }
  0xcc   :  { %v247_v10 = vpop.f32.mrf.mxu0 }
  0xcd   :  { %v103_v15 = vmax.f32 %v97_v11, 0.0 }
  0xce   :  { %v99_v12 = vpop.f32.mrf.mxu0 }
  0xcf   :  { %v100_v13 = vadd.f32 %v218_v8, %v99_v12 }
  0xd0   :  { %v248_v14 = vpop.f32.mrf.mxu0 }
  0xd1   :  { %v104_v16 = vmax.f32 %v100_v13, 0.0 }
  0xd3   :  { %v107_v17 = vpack.c.bf16 %v104_v16, %v103_v15 }
  0xd5   :  { %258 = vmatmul.mubr.msk.bf16.vlgmr.msra.gmra.mxu1 %vm140_vm2, %v107_v17 }
 0x195   :  { %v178_v19 = vpop.f32.mrf.mxu1 }
 0x196   :  { %v185_v20 = vadd.f32 %v178_v19, %v105_v18 }
 0x197   :  { %v259_v21 = vpop.f32.mrf.mxu1 }
 0x198   :  { %187 = vst.msk [vmem:[#allocation2] sm:$0xff] %vm25_vm0, %v185_v20 }
 0x199   :  { %v181_v23 = vpop.f32.mrf.mxu1 }
 0x19a   :  { %v186_v24 = vadd.f32 %v181_v23, %v106_v22 }
 0x19b   :  { %v260_v25 = vpop.f32.mrf.mxu1 }
 0x19c   :  { %188 = vst.msk [vmem:[#allocation2 + $0x8] sm:$0xff] %vm25_vm0, %v186_v24 }
 0x19f   :  { %v192_v27 = vld [vmem:[#allocation2] sm:$0xff] }
 0x1a0   :  { %v201_v28 = vadd.f32 %v228_v26, %v192_v27 }
 0x1a2   :  { %v231_v29 = vpack.c.bf16 %v201_v28, %v201_v28 }
 0x1a3   :  { %v193_v30 = vld [vmem:[#allocation2 + $0x8] sm:$0xff] }
 0x1a4   :  { %212 = vst.msk [vmem:[%s345_s5] sm:$0xf] %vm211_vm3, %v231_v29  ;;  %v202_v31 = vadd.f32 %v228_v26, %v193_v30 }
 0x1a6   :  { %v232_v32 = vpack.c.bf16 %v202_v31, %v202_v31 }
 0x1a8   :  { %213 = vst.msk [vmem:[%s345_s5 + $0x4] sm:$0xf] %vm211_vm3, %v232_v32 }

// kernel: transformer_forward.49
= control target key start
LH: loop header
LB: loop body
LE: loop exit
PB: predicated region body
PF: predicated region fallthrough
CT: control target
= control target key end

     0   :  { %vm18_vm0 = vcmask 261120   ;;  %vm77_vm1 = vcmask 257024   ;;  %s133_s0 = inlined_call_operand.vmem [shape: bf16[16,32], index: 0, kind: input, shape index: {}]   ;;  %s134_s1 = inlined_call_operand.vmem [shape: f32[1,32], index: 1, kind: input, shape index: {}]   ;;  %s135_s2 = inlined_call_operand.vmem [shape: f32[1,32], index: 2, kind: input, shape index: {}]   ;;  %s136_s3 = inlined_call_operand.vmem [shape: bf16[16,32], index: 3, kind: output, shape index: {}]  }
   0x1   :  { %v91_v0 = vld [vmem:[%s133_s0] sm:$0xff]  }
   0x2   :  { %v92_v1 = vunpack.c.l.bf16 %v91_v0  ;;  %v93_v2 = vunpack.c.h.bf16 %v91_v0  ;;  %v84_v27 = vld [vmem:[%s134_s1] ss:$0 sm:$0xff] }
   0x3   :  { %v85_v29 = vld [vmem:[%s135_s2] ss:$0 sm:$0xff] }
   0x4   :  { %v19_v3 = vsel %vm18_vm0, %v92_v1, 0.0  ;;  %v25_v4 = vmul.f32 %v92_v1, %v92_v1  ;;  %v26_v5 = vmul.f32 %v93_v2, %v93_v2  ;;  %v22_v7 = vsel %vm18_vm0, %v93_v2, 0.0 }
   0x5   :  { %20 = vadd.xlane.f32.xlu0 %v19_v3 }
   0x6   :  { %v27_v6 = vsel %vm18_vm0, %v25_v4, 0.0  ;;  %v30_v8 = vsel %vm18_vm0, %v26_v5, 0.0 }
   0x7   :  { %28 = vadd.xlane.f32.xlu1 %v27_v6 }
   0x9   :  { %23 = vadd.xlane.f32.xlu0 %v22_v7 }
   0xb   :  { %31 = vadd.xlane.f32.xlu1 %v30_v8 }
  0x8e   :  { %v21_v9 = vpop.xlane.xlu0 %20 }
  0x8f   :  { %v33_v10 = vmul.f32 0.03125, %v21_v9 }
  0x90   :  { %v29_v11 = vpop.xlane.xlu1 %28 }
  0x91   :  { %v37_v12 = vmul.f32 %v33_v10, %v33_v10  ;;  %v35_v13 = vmul.f32 0.03125, %v29_v11  ;;  %v43_v25 = vsub.f32 %v92_v1, %v33_v10 }
  0x92   :  { %v24_v14 = vpop.xlane.xlu0 %23 }
  0x93   :  { %v39_v15 = vsub.f32 %v35_v13, %v37_v12  ;;  %v34_v16 = vmul.f32 0.03125, %v24_v14 }
  0x94   :  { %v32_v17 = vpop.xlane.xlu1 %31 }
  0x95   :  { %v41_v18 = vmax.f32 %v39_v15, 0.0  ;;  %v38_v19 = vmul.f32 %v34_v16, %v34_v16  ;;  %v36_v20 = vmul.f32 0.03125, %v32_v17  ;;  %v44_v31 = vsub.f32 %v93_v2, %v34_v16 }
  0x97   :  { %v45_v21 = vadd.f32 1e-05, %v41_v18  ;;  %v40_v22 = vsub.f32 %v36_v20, %v38_v19 }
  0x99   :  { %94 = vrsqrt.f32 %v45_v21  ;;  %v42_v23 = vmax.f32 %v40_v22, 0.0 }
  0x9b   :  { %v46_v24 = vadd.f32 1e-05, %v42_v23 }
  0x9d   :  { %96 = vrsqrt.f32 %v46_v24 }
  0xa6   :  { %v95_v26 = vpop.eup %94 }
  0xa7   :  { %v49_v28 = vmul.f32 %v95_v26, %v43_v25 }
  0xa9   :  { %v58_v30 = vmul.f32 %v84_v27, %v49_v28 }
  0xaa   :  { %v97_v32 = vpop.eup %96 }
  0xab   :  { %v67_v33 = vadd.f32 %v85_v29, %v58_v30  ;;  %v50_v34 = vmul.f32 %v97_v32, %v44_v31 }
  0xad   :  { %v88_v35 = vpack.c.bf16 %v67_v33, %v67_v33  ;;  %v59_v36 = vmul.f32 %v84_v27, %v50_v34 }
  0xaf   :  { %78 = vst.msk [vmem:[%s136_s3] sm:$0xf] %vm77_vm1, %v88_v35  ;;  %v68_v37 = vadd.f32 %v85_v29, %v59_v36 }
  0xb1   :  { %v89_v38 = vpack.c.bf16 %v68_v37, %v68_v37 }
  0xb3   :  { %79 = vst.msk [vmem:[%s136_s3 + $0x4] sm:$0xf] %vm77_vm1, %v89_v38 }

// kernel: transformer_forward.55
= control target key start
LH: loop header
LB: loop body
LE: loop exit
PB: predicated region body
PF: predicated region fallthrough
CT: control target
= control target key end

     0   :  { %vm19_vm0 = vcmask 523264   ;;  %v151_v0 = vmov 0.0   ;;  %vm152_vm1 = vmmov 0   ;;  %vm47_vm2 = vcmask 261120   ;;  %s195_s1 = inlined_call_operand.vmem [shape: bf16[32,64], index: 1, kind: input, shape index: {}]   ;;  %s196_s0 = inlined_call_operand.vmem [shape: bf16[16,32], index: 0, kind: input, shape index: {}]   ;;  %s197_s2 = inlined_call_operand.vmem [shape: f32[1,64], index: 2, kind: input, shape index: {}]   ;;  %s198_s3 = inlined_call_operand.vmem [shape: bf16[16,64], index: 3, kind: output, shape index: {}]  }
   0x1   :  { %138 = vmatprep.subr.bf16.mxu0 %v151_v0  ;;  %v148_v1 = vld [vmem:[%s195_s1 + $0x8] sm:$0xff]   ;;  %142 = vmatprep.mubr.msk.bf16.mxu0 %vm152_vm1, %v151_v0  ;;  %20 = vst.msk [vmem:[#allocation2] sm:$0xff] %vm19_vm0, %v151_v0  ;;  %21 = vst.msk [vmem:[#allocation2 + $0x8] sm:$0xff] %vm19_vm0, %v151_v0  ;;  %v149_v2 = vld [vmem:[%s195_s1] sm:$0xff]   ;;  %vm119_vm3 = vcmask 519168  }
   0x2   :  { %139 = vmatpush3.bf16.msra.mxu0 %v148_v1  ;;  %v150_v3 = vld [vmem:[%s196_s0] sm:$0xff]  }
   0x3   :  { %140 = vmatprep.subr.bf16.mxu0 %v151_v0  ;;  %v130_v12 = vld [vmem:[%s197_s2] ss:$0 sm:$0xff] }
   0x6   :  { %141 = vmatpush3.bf16.msra.mxu0 %v149_v2 }
   0x8   :  { %v22_v4 = vld [vmem:[#allocation2] sm:$0xff]  ;;  %v23_v8 = vld [vmem:[#allocation2 + $0x8] sm:$0xff] }
   0x9   :  { %143 = vmatmul.mubr.msk.bf16.vlgmr.msra.gmra.mxu0 %vm47_vm2, %v150_v3 }
  0xc9   :  { %v85_v5 = vpop.f32.mrf.mxu0 }
  0xca   :  { %v92_v6 = vadd.f32 %v85_v5, %v22_v4 }
  0xcb   :  { %v144_v7 = vpop.f32.mrf.mxu0 }
  0xcc   :  { %95 = vst.msk [vmem:[#allocation2] sm:$0xff] %vm19_vm0, %v92_v6 }
  0xcd   :  { %v88_v9 = vpop.f32.mrf.mxu0 }
  0xce   :  { %v93_v10 = vadd.f32 %v88_v9, %v23_v8 }
  0xcf   :  { %v145_v11 = vpop.f32.mrf.mxu0 }
  0xd0   :  { %96 = vst.msk [vmem:[#allocation2 + $0x8] sm:$0xff] %vm19_vm0, %v93_v10 }
  0xd3   :  { %v100_v13 = vld [vmem:[#allocation2] sm:$0xff] }
  0xd4   :  { %v109_v14 = vadd.f32 %v130_v12, %v100_v13 }
  0xd6   :  { %v133_v15 = vpack.c.bf16 %v109_v14, %v109_v14 }
  0xd7   :  { %v101_v16 = vld [vmem:[#allocation2 + $0x8] sm:$0xff] }
  0xd8   :  { %120 = vst.msk [vmem:[%s198_s3] sm:$0xf] %vm119_vm3, %v133_v15  ;;  %v110_v17 = vadd.f32 %v130_v12, %v101_v16 }
  0xda   :  { %v134_v18 = vpack.c.bf16 %v110_v17, %v110_v17 }
  0xdc   :  { %121 = vst.msk [vmem:[%s198_s3 + $0x4] sm:$0xf] %vm119_vm3, %v134_v18 }

// kernel: transformer_forward.38
= control target key start
LH: loop header
LB: loop body
LE: loop exit
PB: predicated region body
PF: predicated region fallthrough
CT: control target
= control target key end

     0   :  { %s1126_s12 = smov 0   ;;  %s1128_s13 = smov 0   ;;  %s1305_s0 = inlined_call_operand.vmem [shape: bf16[8,8,8], index: 0, kind: input, shape index: {}]   ;;  %s1306_s1 = inlined_call_operand.vmem [shape: bf16[8,8,8], index: 1, kind: input, shape index: {}]   ;;  %s1307_s2 = inlined_call_operand.vmem [shape: bf16[8,8,8], index: 2, kind: input, shape index: {}]   ;;  %s1308_s3 = inlined_call_operand.vmem [shape: bf16[8,8,8], index: 3, kind: output, shape index: {}]  }
   0x1   :  { %s1130_s14 = smov 0  }
   0x2 LB: > { %s25_s15 = sadd.s32 1, %s1096_s13  ;;  %p941_p0 = scmp.ge.s32.totalorder %s1100_s14, 1  ;;  %s1100_s14 = sphi %s1130_s14, %s13_s14   ;;  %s1096_s13 = sphi %s1128_s13, %s1310_s13   ;;  %s1092_s12 = sphi %s1126_s12, %s1309_s12  }
   0x3   : > { %p27_p1 = scmp.ge.s32.totalorder %s25_s15, 2  ;;  %p182_p2 = scmp.lt.s32.totalorder %s1100_s14, 3 }
   0x5   : > { %s1312_s15 = smov (%p27_p1, %s25_s15), 0  ;;  %p183_p3 = pnand %p941_p0, %p182_p2 }
   0x6   : > { %s942_s16 = sshll.u32 (!%p183_p3), %s1092_s12, 2 }
   0x7   : > { %186 = sbr.rel (%p183_p3) target bundleno = 806 (0x326), region = 32  ;;  %p223_p4 = scmp.lt.s32.totalorder (!%p183_p3), %s942_s16, 7 }
   0xc   : > { %vm266_vm0 = vcmask 64512   ;;  %v1102_v0 = vmov 0.0   ;;  %vm1103_vm1 = vmmov 0   ;;  %s1314_s16 = smov (!%p223_p4, %s942_s16), 7  ;;  %vm257_vm2 = vcmask 7168  }
   0xd   : > { %976 = vmatprep.subr.bf16.mxu0 %v1102_v0  ;;  %982 = vmatprep.subr.bf16.mxu1 %v1102_v0  ;;  %267 = vst.msk [vmem:[#allocation4] sm:$0xff] %vm266_vm0, %v1102_v0  ;;  %268 = vst.msk [vmem:[#allocation4 + $0x8] sm:$0xff] %vm266_vm0, %v1102_v0  ;;  %s1158_s17 = sshll.u32 %s1314_s16, 2  ;;  %v1104_v13 = vmov -inf   ;;  %v1105_v38 = vmov 0   ;;  %vm600_vm3 = vcmask 1043456  }
   0xe   : > { %269 = vst.msk [vmem:[#allocation4 + $0x10] sm:$0xff] %vm266_vm0, %v1102_v0  ;;  %270 = vst.msk [vmem:[#allocation4 + $0x18] sm:$0xff] %vm266_vm0, %v1102_v0  ;;  %978 = vmatprep.mubr.msk.bf16.mxu0 %vm1103_vm1, %v1102_v0  ;;  %984 = vmatprep.mubr.msk.bf16.mxu1 %vm1103_vm1, %v1102_v0  ;;  %s235_s20 = scalar_lea.vmem %s1306_s1, %s1158_s17  ;;  %s226_s23 = scalar_lea.vmem %s1305_s0, %s1158_s17  ;;  %vm837_vm4 = vcmask 60416  }
   0xf   : > { %v275_v1 = vld [vmem:[%s235_s20] sm:$0xf]  ;;  %v276_v2 = vld [vmem:[%s235_s20 + $0x4] sm:$0xf]  ;;  %v277_v5 = vld [vmem:[%s235_s20 + $0x8] sm:$0xf]  ;;  %1052 = vset.pattern.permute.xlu0 %v1105_v38  ;;  %1053 = vset.pattern.permute.xlu1 %v1105_v38  ;;  %s244_s26 = scalar_lea.vmem %s1307_s2, %s1158_s17  ;;  %s250_s29 = scalar_lea.vmem %s1308_s3, %s1158_s17 }
  0x10   : > { %v284_v3 = vsel %vm266_vm0, %v275_v1, 0  ;;  %v330_v4 = vsel %vm266_vm0, %v276_v2, 0  ;;  %v278_v6 = vld [vmem:[%s235_s20 + $0xc] sm:$0xf]  ;;  %v271_v7 = vld [vmem:[%s226_s23] sm:$0xf] }
  0x11   : > { %977 = vmatpush3.bf16.xpose.msra.mxu0 %v284_v3  ;;  %983 = vmatpush3.bf16.xpose.msra.mxu1 %v330_v4  ;;  %v272_v8 = vld [vmem:[%s226_s23 + $0x4] sm:$0xf]  ;;  %v376_v9 = vsel %vm266_vm0, %v277_v5, 0  ;;  %v422_v10 = vsel %vm266_vm0, %v278_v6, 0  ;;  %v273_v11 = vld [vmem:[%s226_s23 + $0x8] sm:$0xf] }
  0x12   : > { %988 = vmatprep.subr.bf16.mxu0 %v1102_v0  ;;  %994 = vmatprep.subr.bf16.mxu1 %v1102_v0  ;;  %v274_v12 = vld [vmem:[%s226_s23 + $0xc] sm:$0xf]  ;;  %258 = vst.msk [vmem:[#allocation2] sm:$0xff] %vm257_vm2, %v1104_v13  ;;  %259 = vst.msk [vmem:[#allocation2 + $0x8] sm:$0xff] %vm257_vm2, %v1104_v13  ;;  %v593_v54 = vld [vmem:[%s244_s26] sm:$0xf] }
  0x13   : > { %260 = vst.msk [vmem:[#allocation2 + $0x10] sm:$0xff] %vm257_vm2, %v1104_v13  ;;  %261 = vst.msk [vmem:[#allocation2 + $0x18] sm:$0xff] %vm257_vm2, %v1104_v13  ;;  %v602_v56 = vsel %vm600_vm3, %v593_v54, 0  ;;  %v594_v57 = vld [vmem:[%s244_s26 + $0x4] sm:$0xf] }
  0x14   : > { %262 = vst.msk [vmem:[#allocation3] sm:$0xff] %vm257_vm2, %v1102_v0  ;;  %263 = vst.msk [vmem:[#allocation3 + $0x8] sm:$0xff] %vm257_vm2, %v1102_v0  ;;  %v648_v58 = vsel %vm600_vm3, %v594_v57, 0  ;;  %v595_v59 = vld [vmem:[%s244_s26 + $0x8] sm:$0xf] }
  0x15   : > { %264 = vst.msk [vmem:[#allocation3 + $0x10] sm:$0xff] %vm257_vm2, %v1102_v0  ;;  %265 = vst.msk [vmem:[#allocation3 + $0x18] sm:$0xff] %vm257_vm2, %v1102_v0  ;;  %v694_v60 = vsel %vm600_vm3, %v595_v59, 0  ;;  %v596_v61 = vld [vmem:[%s244_s26 + $0xc] sm:$0xf] }
  0x16   : > { %v740_v62 = vsel %vm600_vm3, %v596_v61, 0 }
  0x18   : > { %979 = vmatmul.mubr.msk.bf16.vlgmr.msra.gmra.mxu0 %vm266_vm0, %v271_v7  ;;  %985 = vmatmul.mubr.msk.bf16.vlgmr.msra.gmra.mxu1 %vm266_vm0, %v272_v8 }
  0x19   : > { %989 = vmatpush3.bf16.xpose.msra.mxu0 %v376_v9  ;;  %995 = vmatpush3.bf16.xpose.msra.mxu1 %v422_v10  ;;  %v1213_v39 = vld [vmem:[#allocation2] sm:$0xff]  ;;  %v1218_v42 = vld [vmem:[#allocation2 + $0x8] sm:$0xff] }
  0x1a   : > { %990 = vmatprep.mubr.msk.bf16.mxu0 %vm1103_vm1, %v1102_v0  ;;  %996 = vmatprep.mubr.msk.bf16.mxu1 %vm1103_vm1, %v1102_v0  ;;  %v1228_v46 = vld [vmem:[#allocation2 + $0x10] sm:$0xff]  ;;  %v1238_v50 = vld [vmem:[#allocation2 + $0x18] sm:$0xff] }
  0x1b   : > { %1000 = vmatprep.subr.bf16.mxu0 %v1102_v0  ;;  %1006 = vmatprep.subr.bf16.mxu1 %v1102_v0 }
  0x1c   : > { %v534_v38 = vld [vmem:[#allocation3 + $0x10] sm:$0xff] }
  0x20   : > { %991 = vmatmul.mubr.msk.bf16.vlgmr.msra.gmra.mxu0 %vm266_vm0, %v273_v11  ;;  %997 = vmatmul.mubr.msk.bf16.vlgmr.msra.gmra.mxu1 %vm266_vm0, %v274_v12 }
  0x21   : > { %1002 = vmatprep.mubr.msk.bf16.mxu0 %vm1103_vm1, %v1102_v0  ;;  %1008 = vmatprep.mubr.msk.bf16.mxu1 %vm1103_vm1, %v1102_v0 }
  0x22   : > { %1001 = vmatpush3.bf16.msra.mxu0 %v602_v56  ;;  %1007 = vmatpush3.bf16.msra.mxu1 %v648_v58  ;;  %v561_v56 = vld [vmem:[#allocation4] sm:$0xff]  ;;  %v562_v58 = vld [vmem:[#allocation4 + $0x8] sm:$0xff] }
  0x23   : > { %1012 = vmatprep.subr.bf16.mxu0 %v1102_v0  ;;  %1018 = vmatprep.subr.bf16.mxu1 %v1102_v0 }
  0xd8   : > { %v320_v14 = vpop.f32.mrf.mxu0  ;;  %v366_v15 = vpop.f32.mrf.mxu1 }
  0xd9   : > { %v1200_v16 = vmul.f32 0.35355338, %v320_v14  ;;  %v1202_v17 = vmul.f32 0.35355338, %v366_v15 }
  0xda   : > { %v980_v18 = vpop.f32.mrf.mxu0  ;;  %v986_v19 = vpop.f32.mrf.mxu1 }
  0xdb   : > { %v472_v20 = vsel %vm266_vm0, %v1200_v16, -inf  ;;  %v475_v23 = vsel %vm266_vm0, %v1202_v17, -inf }
  0xdc   : > { %v369_v21 = vpop.f32.mrf.mxu1  ;;  %473 = vmax.xlane.f32.xlu0 %v472_v20  ;;  %v323_v22 = vpop.f32.mrf.mxu0 }
  0xde   : > { %v981_v24 = vpop.f32.mrf.mxu0  ;;  %v987_v25 = vpop.f32.mrf.mxu1 }
  0xe0   : > { %v458_v26 = vpop.f32.mrf.mxu1  ;;  %476 = vmax.xlane.f32.xlu0 %v475_v23  ;;  %v412_v27 = vpop.f32.mrf.mxu0 }
  0xe1   : > { %v1208_v28 = vmul.f32 0.35355338, %v458_v26  ;;  %v466_v29 = vmul.f32 0.35355338, %v412_v27 }
  0xe2   : > { %v992_v30 = vpop.f32.mrf.mxu0  ;;  %v998_v31 = vpop.f32.mrf.mxu1 }
  0xe3   : > { %v478_v32 = vsel %vm266_vm0, %v466_v29, -inf  ;;  %v481_v35 = vsel %vm266_vm0, %v1208_v28, -inf  ;;  %v532_v31 = vld [vmem:[#allocation3] sm:$0xff] }
  0xe4   : > { %v461_v33 = vpop.f32.mrf.mxu1  ;;  %479 = vmax.xlane.f32.xlu1 %v478_v32  ;;  %v415_v34 = vpop.f32.mrf.mxu0 }
  0xe5   : > { %v533_v34 = vld [vmem:[#allocation3 + $0x8] sm:$0xff] }
  0xe6   : > { %v993_v36 = vpop.f32.mrf.mxu0  ;;  %v999_v37 = vpop.f32.mrf.mxu1 }
  0xe8   : > { %482 = vmax.xlane.f32.xlu1 %v481_v35 }
 0x165   : > { %v474_v40 = vpop.xlane.xlu0 %473 }
 0x166   : > { %v1216_v41 = vmax.f32 %v1213_v39, %v474_v40 }
 0x168   : > { %v488_v43 = vsub.f32 %v1213_v39, %v1216_v41  ;;  %790 = vst.msk [vmem:[#allocation2] sm:$0xff] %vm257_vm2, %v1216_v41  ;;  %502 = vperm.xlu0 %1052, %v1216_v41  }
 0x169   : > { %v477_v44 = vpop.xlane.xlu0 %476 }
 0x16a   : > { %v1226_v45 = vmax.f32 %v1218_v42, %v477_v44  ;;  %v492_v23 = vmul.f32 1.442695, %v488_v43 }
 0x16c   : > { %v489_v47 = vsub.f32 %v1218_v42, %v1226_v45  ;;  %791 = vst.msk [vmem:[#allocation2 + $0x8] sm:$0xff] %vm257_vm2, %v1226_v45  ;;  %507 = vperm.xlu1 %1053, %v1226_v45   ;;  %v535_v42 = vld [vmem:[#allocation3 + $0x18] sm:$0xff] }
 0x16d   : > { %v480_v48 = vpop.xlane.xlu1 %479 }
 0x16e   : > { %v1236_v49 = vmax.f32 %v1228_v46, %v480_v48  ;;  %v494_v21 = vmul.f32 1.442695, %v489_v47 }
 0x170   : > { %v490_v51 = vsub.f32 %v1228_v46, %v1236_v49  ;;  %792 = vst.msk [vmem:[#allocation2 + $0x10] sm:$0xff] %vm257_vm2, %v1236_v49  ;;  %512 = vperm.xlu1 %1053, %v1236_v49  }
 0x171   : > { %v483_v52 = vpop.xlane.xlu1 %482 }
 0x172   : > { %v1246_v53 = vmax.f32 %v1238_v50, %v483_v52 }
 0x174   : > { %v491_v55 = vsub.f32 %v1238_v50, %v1246_v53  ;;  %793 = vst.msk [vmem:[#allocation2 + $0x18] sm:$0xff] %vm257_vm2, %v1246_v53  ;;  %517 = vperm.xlu1 %1053, %v1246_v53  }
 0x176   : > { %v498_v26 = vmul.f32 1.442695, %v491_v55 }
 0x1e3   : > { %v503_v63 = vpop.permute.xlu0 %502 }
 0x1e4   : > { %v520_v1 = vsub.f32 %v1200_v16, %v503_v63 }
 0x1e6   : > { %v524_v2 = vmul.f32 1.442695, %v520_v1 }
 0x1e7   : > { %v508_v3 = vpop.permute.xlu1 %507 }
 0x1e8   : > { %1054 = vpow2.f32 %v524_v2  ;;  %v521_v4 = vsub.f32 %v1202_v17, %v508_v3  ;;  %v563_v2 = vld [vmem:[#allocation4 + $0x10] sm:$0xff] }
 0x1ea   : > { %v526_v5 = vmul.f32 1.442695, %v521_v4 }
 0x1eb   : > { %v513_v6 = vpop.permute.xlu1 %512 }
 0x1ec   : > { %1056 = vpow2.f32 %v526_v5  ;;  %v522_v7 = vsub.f32 %v466_v29, %v513_v6 }
 0x1ee   : > { %v528_v8 = vmul.f32 1.442695, %v522_v7 }
 0x1ef   : > { %v518_v9 = vpop.permute.xlu1 %517 }
 0x1f0   : > { %1058 = vpow2.f32 %v528_v8  ;;  %v523_v10 = vsub.f32 %v1208_v28, %v518_v9 }
 0x1f2   : > { %v530_v11 = vmul.f32 1.442695, %v523_v10  ;;  %v564_v10 = vld [vmem:[#allocation4 + $0x18] sm:$0xff] }
 0x1f4   : > { %1060 = vpow2.f32 %v530_v11 }
 0x1f5   : > { %v1055_v12 = vpop.eup %1054  ;;  %1062 = vpow2.f32 %v494_v21 }
 0x1f6   : > { %v540_v13 = vsel %vm266_vm0, %v1055_v12, 0.0  ;;  %v589_v14 = vpack.c.bf16 %v1055_v12, %v1055_v12  ;;  %1064 = vpow2.f32 %v492_v23 }
 0x1f7   : > { %541 = vadd.xlane.f32.xlu1 %v540_v13 }
 0x1f8   : > { %1003 = vmatmul.mubr.msk.bf16.vlgmr.msra.gmra.mxu0 %vm266_vm0, %v589_v14 }
 0x1f9   : > { %v1057_v15 = vpop.eup %1056  ;;  %1013 = vmatpush3.bf16.msra.mxu0 %v694_v60  ;;  %1014 = vmatprep.mubr.msk.bf16.mxu0 %vm1103_vm1, %v1102_v0 }
 0x1fa   : > { %v543_v16 = vsel %vm266_vm0, %v1057_v15, 0.0  ;;  %v590_v17 = vpack.c.bf16 %v1057_v15, %v1057_v15 }
 0x1fb   : > { %544 = vadd.xlane.f32.xlu0 %v543_v16 }
 0x1fc   : > { %1009 = vmatmul.mubr.msk.bf16.vlgmr.msra.gmra.mxu1 %vm266_vm0, %v590_v17 }
 0x1fd   : > { %v1059_v18 = vpop.eup %1058  ;;  %1019 = vmatpush3.bf16.msra.mxu1 %v740_v62  ;;  %1020 = vmatprep.mubr.msk.bf16.mxu1 %vm1103_vm1, %v1102_v0  ;;  %v496_v0 = vmul.f32 1.442695, %v490_v51 }
 0x1fe   : > { %v546_v19 = vsel %vm266_vm0, %v1059_v18, 0.0  ;;  %v591_v20 = vpack.c.bf16 %v1059_v18, %v1059_v18 }
 0x1ff   : > { %547 = vadd.xlane.f32.xlu1 %v546_v19  ;;  %1066 = vpow2.f32 %v496_v0 }
 0x200   : > { %1015 = vmatmul.mubr.msk.bf16.vlgmr.msra.gmra.mxu0 %vm266_vm0, %v591_v20  ;;  %1068 = vpow2.f32 %v498_v26 }
 0x201   : > { %v1061_v22 = vpop.eup %1060 }
 0x202   : > { %v549_v24 = vsel %vm266_vm0, %v1061_v22, 0.0  ;;  %v592_v25 = vpack.c.bf16 %v1061_v22, %v1061_v22  ;;  %v1063_v27 = vpop.eup %1062 }
 0x203   : > { %550 = vadd.xlane.f32.xlu1 %v549_v24  ;;  %v1065_v28 = vpop.eup %1064  ;;  %v537_v36 = vmul.f32 %v1063_v27, %v533_v34 }
 0x204   : > { %1021 = vmatmul.mubr.msk.bf16.vlgmr.msra.gmra.mxu1 %vm266_vm0, %v592_v25  ;;  %v536_v32 = vmul.f32 %v1065_v28, %v532_v31 }
 0x20c   : > { %v1067_v29 = vpop.eup %1066 }
 0x20d   : > { %v1069_v30 = vpop.eup %1068  ;;  %v538_v40 = vmul.f32 %v1067_v29, %v534_v38 }
 0x20e   : > { %v539_v45 = vmul.f32 %v1069_v30, %v535_v42 }
 0x211   : > { %572 = vperm.xlu0 %1052, %v1063_v27  }
 0x214   : > { %567 = vperm.xlu1 %1053, %v1065_v28  }
 0x218   : > { %577 = vperm.xlu1 %1053, %v1067_v29  }
 0x21c   : > { %582 = vperm.xlu1 %1053, %v1069_v30  }
 0x280   : > { %v542_v33 = vpop.xlane.xlu1 %541 }
 0x281   : > { %v552_v35 = vadd.f32 %v542_v33, %v536_v32 }
 0x283   : > { %557 = vst.msk [vmem:[#allocation3] sm:$0xff] %vm257_vm2, %v552_v35 }
 0x284   : > { %v545_v37 = vpop.xlane.xlu0 %544 }
 0x285   : > { %v553_v39 = vadd.f32 %v545_v37, %v537_v36 }
 0x287   : > { %558 = vst.msk [vmem:[#allocation3 + $0x8] sm:$0xff] %vm257_vm2, %v553_v39 }
 0x288   : > { %v548_v41 = vpop.xlane.xlu1 %547 }
 0x289   : > { %v554_v43 = vadd.f32 %v548_v41, %v538_v40 }
 0x28a   : > { %v801_v44 = vld [vmem:[#allocation3] sm:$0xff] }
 0x28b   : > { %559 = vst.msk [vmem:[#allocation3 + $0x10] sm:$0xff] %vm257_vm2, %v554_v43  ;;  %1070 = vrcp.f32 %v801_v44 }
 0x28c   : > { %v551_v46 = vpop.xlane.xlu1 %550  ;;  %v573_v59 = vpop.permute.xlu0 %572 }
 0x28d   : > { %v555_v47 = vadd.f32 %v551_v46, %v539_v45  ;;  %v586_v1 = vmul.f32 %v573_v59, %v562_v58 }
 0x28e   : > { %v802_v48 = vld [vmem:[#allocation3 + $0x8] sm:$0xff] }
 0x28f   : > { %560 = vst.msk [vmem:[#allocation3 + $0x18] sm:$0xff] %vm257_vm2, %v555_v47  ;;  %1072 = vrcp.f32 %v802_v48 }
 0x290   : > { %v568_v55 = vpop.permute.xlu1 %567 }
 0x291   : > { %v585_v57 = vmul.f32 %v568_v55, %v561_v56 }
 0x292   : > { %v803_v49 = vld [vmem:[#allocation3 + $0x10] sm:$0xff] }
 0x293   : > { %1074 = vrcp.f32 %v803_v49 }
 0x294   : > { %v578_v61 = vpop.permute.xlu1 %577 }
 0x295   : > { %v587_v8 = vmul.f32 %v578_v61, %v563_v2 }
 0x296   : > { %v804_v50 = vld [vmem:[#allocation3 + $0x18] sm:$0xff] }
 0x297   : > { %1076 = vrcp.f32 %v804_v50 }
 0x298   : > { %v1071_v51 = vpop.eup %1070  ;;  %v583_v9 = vpop.permute.xlu1 %582 }
 0x299   : > { %811 = vperm.xlu1 %1053, %v1071_v51   ;;  %v588_v16 = vmul.f32 %v583_v9, %v564_v10 }
 0x29c   : > { %v1073_v52 = vpop.eup %1072 }
 0x29d   : > { %816 = vperm.xlu0 %1052, %v1073_v52  }
 0x2a0   : > { %v1075_v53 = vpop.eup %1074 }
 0x2a1   : > { %821 = vperm.xlu1 %1053, %v1075_v53  }
 0x2a4   : > { %v1077_v54 = vpop.eup %1076 }
 0x2a5   : > { %826 = vperm.xlu0 %1052, %v1077_v54  }
 0x2b8   : > { %v638_v60 = vpop.f32.mrf.mxu0 }
 0x2b9   : > { %v782_v62 = vadd.f32 %v638_v60, %v585_v57 }
 0x2ba   : > { %v1004_v63 = vpop.f32.mrf.mxu0 }
 0x2bb   : > { %786 = vst.msk [vmem:[#allocation4] sm:$0xff] %vm266_vm0, %v782_v62 }
 0x2bc   : > { %v641_v3 = vpop.f32.mrf.mxu0  ;;  %v684_v4 = vpop.f32.mrf.mxu1 }
 0x2bd   : > { %v783_v5 = vadd.f32 %v684_v4, %v586_v1 }
 0x2be   : > { %v1005_v6 = vpop.f32.mrf.mxu0  ;;  %v1010_v7 = vpop.f32.mrf.mxu1 }
 0x2bf   : > { %787 = vst.msk [vmem:[#allocation4 + $0x8] sm:$0xff] %vm266_vm0, %v783_v5 }
 0x2c0   : > { %v687_v11 = vpop.f32.mrf.mxu1  ;;  %v730_v12 = vpop.f32.mrf.mxu0 }
 0x2c1   : > { %v784_v13 = vadd.f32 %v730_v12, %v587_v8 }
 0x2c2   : > { %v1011_v14 = vpop.f32.mrf.mxu1  ;;  %v1016_v15 = vpop.f32.mrf.mxu0  ;;  %v797_v25 = vld [vmem:[#allocation4] sm:$0xff] }
 0x2c3   : > { %788 = vst.msk [vmem:[#allocation4 + $0x10] sm:$0xff] %vm266_vm0, %v784_v13 }
 0x2c4   : > { %v733_v17 = vpop.f32.mrf.mxu0  ;;  %v776_v18 = vpop.f32.mrf.mxu1 }
 0x2c5   : > { %v785_v19 = vadd.f32 %v776_v18, %v588_v16 }
 0x2c6   : > { %v1017_v20 = vpop.f32.mrf.mxu0  ;;  %v1022_v21 = vpop.f32.mrf.mxu1  ;;  %v798_v27 = vld [vmem:[#allocation4 + $0x8] sm:$0xff] }
 0x2c7   : > { %789 = vst.msk [vmem:[#allocation4 + $0x18] sm:$0xff] %vm266_vm0, %v785_v19 }
 0x2c8   : > { %v779_v22 = vpop.f32.mrf.mxu1 }
 0x2ca   : > { %v1023_v23 = vpop.f32.mrf.mxu1  ;;  %v799_v32 = vld [vmem:[#allocation4 + $0x10] sm:$0xff] }
 0x2ce   : > { %v800_v36 = vld [vmem:[#allocation4 + $0x18] sm:$0xff] }
 0x314   : > { %v812_v24 = vpop.permute.xlu1 %811 }
 0x315   : > { %v829_v0 = vmul.f32 %v812_v24, %v797_v25 }
 0x317   : > { %v833_v26 = vpack.c.bf16 %v829_v0, %v829_v0 }
 0x318   : > { %v817_v28 = vpop.permute.xlu0 %816 }
 0x319   : > { %838 = vst.msk [vmem:[%s250_s29] sm:$0xf] %vm837_vm4, %v833_v26  ;;  %v830_v29 = vmul.f32 %v817_v28, %v798_v27 }
 0x31b   : > { %v834_v30 = vpack.c.bf16 %v830_v29, %v830_v29 }
 0x31c   : > { %v822_v31 = vpop.permute.xlu1 %821 }
 0x31d   : > { %839 = vst.msk [vmem:[%s250_s29 + $0x4] sm:$0xf] %vm837_vm4, %v834_v30  ;;  %v831_v33 = vmul.f32 %v822_v31, %v799_v32 }
 0x31f   : > { %v835_v34 = vpack.c.bf16 %v831_v33, %v831_v33 }
 0x320   : > { %v827_v35 = vpop.permute.xlu0 %826 }
 0x321   : > { %840 = vst.msk [vmem:[%s250_s29 + $0x8] sm:$0xf] %vm837_vm4, %v835_v34  ;;  %v832_v37 = vmul.f32 %v827_v35, %v800_v36 }
 0x323   : > { %v836_v38 = vpack.c.bf16 %v832_v37, %v832_v37 }
 0x325   : > { %841 = vst.msk [vmem:[%s250_s29 + $0xc] sm:$0xf] %vm837_vm4, %v836_v38 }
 0x326 PF: > { %s13_s14 = sadd.s32 1, %s1100_s14   ;;  %s1309_s12 = smov %s1096_s13 }
 0x327   : > { %p10_p5 = scmp.ge.s32.totalorder %s13_s14, 4   ;;  %s1310_s13 = smov %s1312_s15 }
 0x329   :  { %12 = sbr.rel (!%p10_p5) target bundleno = 2 (0x2), region = 76 }

// kernel: transformer_forward.73
= control target key start
LH: loop header
LB: loop body
LE: loop exit
PB: predicated region body
PF: predicated region fallthrough
CT: control target
= control target key end

     0   :  { %v174_v1 = vmov 0.0   ;;  %vm175_vm0 = vmmov 0   ;;  %s214_s0 = inlined_call_operand.vmem [shape: bf16[16,32], index: 0, kind: input, shape index: {}]   ;;  %s215_s1 = inlined_call_operand.vmem [shape: bf16[32,128], index: 1, kind: input, shape index: {}]   ;;  %s216_s2 = inlined_call_operand.vmem [shape: f32[1,128], index: 2, kind: input, shape index: {}]   ;;  %s217_s3 = inlined_call_operand.hbm [shape: f32[16,128], index: 3, kind: output, shape index: {}]  }
   0x1   :  { %v149_v0 = vld [vmem:[%s215_s1 + $0x8] sm:$0xff]   ;;  %136 = vmatprep.subr.bf16.mxu0 %v174_v1  ;;  %v150_v2 = vld [vmem:[%s215_s1] sm:$0xff]   ;;  %140 = vmatprep.mubr.msk.bf16.mxu0 %vm175_vm0, %v174_v1 }
   0x2   :  { %137 = vmatpush3.bf16.msra.mxu0 %v149_v0 }
   0x3   :  { %138 = vmatprep.subr.bf16.mxu0 %v174_v1 }
   0x4   :  { %8 = vsyncpa [#allocation4], 0  ;;  %v151_v3 = vld [vmem:[%s214_s0] sm:$0xff]   ;;  %vm47_vm1 = vcmask 261120   ;;  %s176_s20 = smov [#allocation3]  }
   0x5   :  { %v132_v4 = vld [vmem:[%s216_s2] ss:$0 sm:$0xff]  ;;  %s117_s21 = sshll.u32 %s176_s20, 4  ;;  %s118_s21 = int_to_ptr.vmem [resolvable:$true] %s117_s21 }
   0x6   :  { %139 = vmatpush3.bf16.msra.mxu0 %v150_v2  ;;  %s152_s1 = scalar_lea.vmem %s118_s21, 256  ;;  %p157_p1 = scmp.lt.s32.totalorder %s118_s21, %s118_s21 }
   0x7   :  { %p153_p0 = scmp.ne.s32.totalorder %s118_s21, %s152_s1  ;;  %p158_p2 = scmp.lt.s32.totalorder %s152_s1, %s152_s1 }
   0x9   :  { %141 = vmatmul.mubr.msk.bf16.vlgmr.msra.gmra.mxu0 %vm47_vm1, %v151_v3  ;;  %p159_p3 = por %p158_p2, %p157_p1 }
   0xb   :  { %p160_p4 = pnand %p159_p3, %p153_p0 }
  0xc9   :  { %v85_v5 = vpop.f32.mrf.mxu0 }
  0xca   :  { %v108_v6 = vadd.f32 %v132_v4, %v85_v5 }
  0xcb   :  { %v142_v7 = vpop.f32.mrf.mxu0 }
  0xcc   :  { %110 = vst [vmem:[#allocation3] sm:$0xff] %v108_v6 }
  0xcd   :  { %v88_v8 = vpop.f32.mrf.mxu0 }
  0xce   :  { %v109_v9 = vadd.f32 %v132_v4, %v88_v8 }
  0xcf   :  { %v143_v10 = vpop.f32.mrf.mxu0 }
  0xd0   :  { %111 = vst [vmem:[#allocation3 + $0x8] sm:$0xff] %v109_v9 }
  0xd1   :  { %163 = shalt.err (!%p160_p4)
}
  0xd2   :  { %s177_s0 = smov 128   ;;  %s178_s2 = smov 8  }
  0xd3   :  { %123 = dma.vmem_to_hbm [thread:$0]  %s118_s21, 256, %s217_s3, [#allocation4], %s177_s0, %s177_s0, %s178_s2  }
  0xd4   :  { %172 = dma.done.wait [#allocation4], 256  }
  0xd5   :  { %173 = vsyncadd [#allocation4], 4294967040 }
  0xd6   :  { %127 = vsyncpa [#allocation4], 1 }

</bundles_post_ra>
